<compile_context>
chip_gen: v6e
topology: v6e:2x2x1
jax: 0.10.0
libtpu: 0.0.40
codegen_flags: <defaults>
</compile_context>

<pallas_src>
import functools

import jax
import jax.numpy as jnp
from jax.experimental import pallas as pl
from jax.experimental.pallas import tpu as pltpu


def _round_up(x, m):
    return ((x + m - 1) // m) * m


# ----------------------------------------------------------------------------
# Kernel A: tiled matmul (im2col patches @ weights, bf16 in / f32 acc) fused
# with per-M-tile partial BatchNorm statistics (per-channel sum / sum-of-sq).
# Grid = (M tiles [parallel], K tiles [arbitrary, innermost reduction]).
# ----------------------------------------------------------------------------
def conv_bn_stats_kernel(p_ref, w_ref, y_ref, psum_ref, pssq_ref,
                         *, tk, w_full):
    k = pl.program_id(1)
    nk = pl.num_programs(1)

    @pl.when(k == 0)
    def _():
        y_ref[...] = jnp.zeros_like(y_ref)

    if w_full:
        # Whole weight matrix is VMEM-resident (constant index_map, fetched
        # once); slice out the current K tile.
        k0 = pl.multiple_of(k * tk, tk)
        w_blk = w_ref[pl.ds(k0, tk), :]
    else:
        w_blk = w_ref[...]

    # y out_spec is constant along k -> the output block itself is the
    # reduction accumulator (no scratch needed).
    y_ref[...] += jnp.dot(p_ref[...], w_blk,
                          preferred_element_type=jnp.float32)

    @pl.when(k == nk - 1)
    def _():
        # Per-tile partial stats.  Padded rows are exactly zero (zero patches,
        # no bias) so they contribute nothing; no row masking required.
        y = y_ref[...]
        psum_ref[...] = jnp.sum(y, axis=0).reshape(psum_ref.shape)
        pssq_ref[...] = jnp.sum(y * y, axis=0).reshape(pssq_ref.shape)


# ----------------------------------------------------------------------------
# Kernel B: elementwise BN normalization (precomputed scale/shift) + LeakyReLU.
# Output aliases the input buffer (pure in-place mem-bound pass).
# ----------------------------------------------------------------------------
def bn_lrelu_kernel(y_ref, scale_ref, shift_ref, o_ref):
    z = y_ref[...] * scale_ref[...] + shift_ref[...]
    o_ref[...] = jnp.where(z >= 0.0, z, 0.1 * z)


class ConvolutionalLayerPallas:
    """Conv2d -> BatchNorm2d (training-mode stats) -> LeakyReLU(0.1)."""

    def __init__(self, in_channels, out_channels, kernel_size, stride, padding,
                 key=None):
        self.cin = in_channels
        self.cout = out_channels
        self.k = kernel_size
        self.s = stride
        self.p = padding
        self.eps = 1e-5

        if key is None:
            key = jax.random.PRNGKey(0)
        kw, kb = jax.random.split(key)
        fan_in = in_channels * kernel_size * kernel_size
        bound = 1.0 / (fan_in ** 0.5)
        # Conv2d params (PyTorch shapes): weight (Cout, Cin, KH, KW), bias (Cout,).
        self.weight = jax.random.uniform(
            kw, (out_channels, in_channels, kernel_size, kernel_size),
            dtype=jnp.float32, minval=-bound, maxval=bound)
        # Bias is kept as a parameter for reference parity, but it is NOT used
        # by the kernels: under training-mode BN it cancels exactly.
        self.bias = jax.random.uniform(
            kb, (out_channels,), dtype=jnp.float32, minval=-bound, maxval=bound)
        # BatchNorm2d affine params (PyTorch defaults).
        self.gamma = jnp.ones((out_channels,), jnp.float32)
        self.beta = jnp.zeros((out_channels,), jnp.float32)

        self._jit_forward = jax.jit(self._forward)

    # ------------------------------------------------------------------ fwd
    def _forward(self, x_nchw, weight, gamma, beta):
        n, c, h, w = x_nchw.shape
        kh = kw = self.k
        s, p = self.s, self.p
        oh = (h + 2 * p - kh) // s + 1
        ow = (w + 2 * p - kw) // s + 1
        cout = self.cout

        # ---- im2col in bf16 (glue) --------------------------------------
        # TODO(synk): build the im2col patches inside the kernel (extra kh/kw
        # reduction grid axes over a padded NHWC input) to avoid the KH*KW HBM
        # blow-up of the materialized patch matrix.
        xb = jnp.transpose(x_nchw, (0, 2, 3, 1)).astype(jnp.bfloat16)  # NHWC
        xb = jnp.pad(xb, ((0, 0), (p, p), (p, p), (0, 0)))
        cols = []
        for ih in range(kh):
            for iw in range(kw):
                cols.append(xb[:, ih:ih + (oh - 1) * s + 1:s,
                               iw:iw + (ow - 1) * s + 1:s, :])
        # (M, K) with K ordered (kh,kw)-major, cin-minor.
        patches = jnp.stack(cols, axis=-2).reshape(n * oh * ow, kh * kw * c)
        m, kdim = patches.shape

        # Weight matrix matching the patch K-ordering, bf16 for the MXU.
        w2 = jnp.transpose(weight, (2, 3, 1, 0)).reshape(kdim, cout)
        w2 = w2.astype(jnp.bfloat16)

        # ---- tiling -------------------------------------------------------
        tk = min(512, _round_up(kdim, 128))
        k_pad = _round_up(kdim, tk)
        nk = k_pad // tk
        c_pad = _round_up(cout, 256) if cout > 128 else 128
        tm = 512
        # Keep the double-buffered f32 output tile under ~16 MiB (v7x safe).
        while tm > 128 and 2 * tm * c_pad * 4 > 16 * 1024 * 1024:
            tm //= 2
        m_pad = _round_up(m, tm)
        ni = m_pad // tm
        # Keep W fully VMEM-resident (fetched once) when it comfortably fits;
        # otherwise stream (tk, c_pad) tiles along k.
        w_full = (nk > 1) and (k_pad * c_pad * 2 <= 8 * 1024 * 1024)

        p_pad = jnp.pad(patches, ((0, m_pad - m), (0, k_pad - kdim)))
        w_pad = jnp.pad(w2, ((0, k_pad - kdim), (0, c_pad - cout)))

        if w_full:
            w_spec = pl.BlockSpec((k_pad, c_pad), lambda i, k: (0, 0))
            w_block_bytes = k_pad * c_pad * 2
        else:
            w_spec = pl.BlockSpec((tk, c_pad), lambda i, k: (k, 0))
            w_block_bytes = tk * c_pad * 2

        vmem_a = 2 * (tm * tk * 2 + w_block_bytes + tm * c_pad * 4
                      + 2 * c_pad * 4) + (8 << 20)
        vmem_a = int(max(vmem_a, 32 << 20))

        y_pad, psum, pssq = pl.pallas_call(
            functools.partial(conv_bn_stats_kernel, tk=tk, w_full=w_full),
            out_shape=(
                jax.ShapeDtypeStruct((m_pad, c_pad), jnp.float32),
                jax.ShapeDtypeStruct((ni, 1, c_pad), jnp.float32),
                jax.ShapeDtypeStruct((ni, 1, c_pad), jnp.float32),
            ),
            grid_spec=pltpu.PrefetchScalarGridSpec(
                num_scalar_prefetch=0,
                grid=(ni, nk),
                in_specs=[
                    pl.BlockSpec((tm, tk), lambda i, k: (i, k)),
                    w_spec,
                ],
                out_specs=[
                    pl.BlockSpec((tm, c_pad), lambda i, k: (i, 0)),
                    pl.BlockSpec((1, 1, c_pad), lambda i, k: (i, 0, 0)),
                    pl.BlockSpec((1, 1, c_pad), lambda i, k: (i, 0, 0)),
                ],
            ),
            compiler_params=pltpu.CompilerParams(
                dimension_semantics=("parallel", "arbitrary"),
                vmem_limit_bytes=vmem_a),
        )(p_pad, w_pad)

        # ---- tiny per-channel stat glue (training-mode BN, biased var) ----
        # TODO(synk): E[y^2]-E[y]^2 can cancel for very large activation means;
        # switch to a shifted / two-pass update if that regime matters.
        col_sum = jnp.sum(psum.reshape(ni, c_pad), axis=0)[:cout]
        col_ssq = jnp.sum(pssq.reshape(ni, c_pad), axis=0)[:cout]
        mean = col_sum / m
        var = col_ssq / m - mean * mean
        inv_std = jax.lax.rsqrt(var + self.eps)
        scale = gamma * inv_std
        shift = beta - mean * scale
        scale_pad = jnp.pad(scale, (0, c_pad - cout)).reshape(1, c_pad)
        shift_pad = jnp.pad(shift, (0, c_pad - cout)).reshape(1, c_pad)

        # ---- BN apply + LeakyReLU (mem-bound elementwise pass) ------------
        tb = tm
        vmem_b = int(max(2 * (2 * tb * c_pad * 4 + 2 * c_pad * 4) + (8 << 20),
                         32 << 20))
        out_pad = pl.pallas_call(
            bn_lrelu_kernel,
            out_shape=jax.ShapeDtypeStruct((m_pad, c_pad), jnp.float32),
            grid_spec=pltpu.PrefetchScalarGridSpec(
                num_scalar_prefetch=0,
                grid=(m_pad // tb,),
                in_specs=[
                    pl.BlockSpec((tb, c_pad), lambda i: (i, 0)),
                    pl.BlockSpec((1, c_pad), lambda i: (0, 0)),
                    pl.BlockSpec((1, c_pad), lambda i: (0, 0)),
                ],
                out_specs=pl.BlockSpec((tb, c_pad), lambda i: (i, 0)),
            ),
            input_output_aliases={0: 0},
            compiler_params=pltpu.CompilerParams(
                dimension_semantics=("parallel",),
                vmem_limit_bytes=vmem_b),
        )(y_pad, scale_pad, shift_pad)

        out = out_pad[:m, :cout].reshape(n, oh, ow, cout)
        return jnp.transpose(out, (0, 3, 1, 2))              # back to NCHW

    def __call__(self, x_nchw):
        return self._jit_forward(x_nchw.astype(jnp.float32),
                                 self.weight, self.gamma, self.beta)


# ----------------------------------------------------------------------------
# Pure-JAX f32 reference (includes the conv bias, which cancels under BN).
# ----------------------------------------------------------------------------
def _reference(layer, x_nchw):
    n, c, h, w = x_nchw.shape
    kh = kw = layer.k
    s, p = layer.s, layer.p
    oh = (h + 2 * p - kh) // s + 1
    ow = (w + 2 * p - kw) // s + 1
    xp = jnp.pad(jnp.transpose(x_nchw.astype(jnp.float32), (0, 2, 3, 1)),
                 ((0, 0), (p, p), (p, p), (0, 0)))
    cols = []
    for ih in range(kh):
        for iw in range(kw):
            cols.append(xp[:, ih:ih + (oh - 1) * s + 1:s,
                           iw:iw + (ow - 1) * s + 1:s, :])
    patches = jnp.stack(cols, axis=-2).reshape(n * oh * ow, kh * kw * c)
    w2 = jnp.transpose(layer.weight, (2, 3, 1, 0)).reshape(kh * kw * c,
                                                           layer.cout)
    y = patches @ w2 + layer.bias[None, :]
    mean = jnp.mean(y, axis=0)
    var = jnp.mean((y - mean) ** 2, axis=0)
    z = (y - mean) * jax.lax.rsqrt(var + layer.eps) * layer.gamma + layer.beta
    z = jnp.where(z >= 0.0, z, 0.1 * z)
    return jnp.transpose(z.reshape(n, oh, ow, layer.cout), (0, 3, 1, 2))


if __name__ == "__main__":
    key = jax.random.PRNGKey(0)
    k_x, k_p = jax.random.split(key)

    batch, cin, cout, hw = 2, 4, 8, 16
    x = jax.random.normal(k_x, (batch, cin, hw, hw), dtype=jnp.float32)

    layer = ConvolutionalLayerPallas(cin, cout, kernel_size=3, stride=1,
                                     padding=1, key=k_p)

    out = layer(x)
    out = jax.block_until_ready(out)

    ref = _reference(layer, x)
    assert out.shape == (batch, cout, hw, hw), out.shape
    err = float(jnp.max(jnp.abs(out - ref)))
    assert jnp.allclose(out, ref, atol=3e-2, rtol=3e-2), err

    print("KERNEL_OK")
</pallas_src>

<mosaic_0001>
module attributes {stable_mosaic.version = 11 : i64} {
  func.func @conv_bn_stats_kernel(%arg0: i32, %arg1: i32, %arg2: memref<512x128xbf16, #tpu.memory_space<vmem>>, %arg3: memref<128x128xbf16, #tpu.memory_space<vmem>>, %arg4: memref<512x128xf32, #tpu.memory_space<vmem>>, %arg5: memref<1x1x128xf32, #tpu.memory_space<vmem>>, %arg6: memref<1x1x128xf32, #tpu.memory_space<vmem>>) attributes {dimension_semantics = [#tpu.dimension_semantics<parallel>, #tpu.dimension_semantics<arbitrary>], iteration_bounds = array<i64: 1, 1>, scalar_prefetch = 0 : i64, scratch_operands = 0 : i64, tpu.core_type = #tpu.core_type<tc>, window_params = [{transform_indices = @transform_0, window_bounds = array<i64: 512, 128>}, {transform_indices = @transform_1, window_bounds = array<i64: 128, 128>}, {transform_indices = @transform_2, window_bounds = array<i64: 512, 128>}, {transform_indices = @transform_3, window_bounds = array<i64: 1, 1, 128>}, {transform_indices = @transform_4, window_bounds = array<i64: 1, 1, 128>}]} {
    %c0_i32 = arith.constant 0 : i32
    %0 = arith.cmpi eq, %arg1, %c0_i32 : i32
    %1 = arith.extui %0 : i1 to i32
    %c0_i32_0 = arith.constant 0 : i32
    %2 = arith.cmpi ne, %1, %c0_i32_0 : i32
    scf.if %2 {
      %cst_10 = arith.constant 0.000000e+00 : f32
      %12 = vector.broadcast %cst_10 : f32 to vector<512x128xf32>
      %c0_11 = arith.constant 0 : index
      %c0_12 = arith.constant 0 : index
      %13 = vector.load %arg4[%c0_11, %c0_12] : memref<512x128xf32, #tpu.memory_space<vmem>>, vector<512x128xf32>
      tpu.vector_store %arg4[%c0_11, %c0_12], %12 {strides = array<i32>} : memref<512x128xf32, #tpu.memory_space<vmem>>, vector<512x128xf32>,
    } else {
    }
    %c0 = arith.constant 0 : index
    %c0_1 = arith.constant 0 : index
    %3 = vector.load %arg3[%c0, %c0_1] : memref<128x128xbf16, #tpu.memory_space<vmem>>, vector<128x128xbf16>
    %c0_2 = arith.constant 0 : index
    %c0_3 = arith.constant 0 : index
    %4 = vector.load %arg4[%c0_2, %c0_3] : memref<512x128xf32, #tpu.memory_space<vmem>>, vector<512x128xf32>
    %c0_4 = arith.constant 0 : index
    %c0_5 = arith.constant 0 : index
    %5 = vector.load %arg2[%c0_4, %c0_5] : memref<512x128xbf16, #tpu.memory_space<vmem>>, vector<512x128xbf16>
    %cst = arith.constant dense<0.000000e+00> : vector<512x128xf32>
    %6 = tpu.matmul %5, %3, %cst {dimension_numbers = #tpu.dot_dimension_numbers<[1], [0], [0], [1], [0, 0, 1, 1], [], []>} : vector<512x128xbf16>, vector<128x128xbf16>, vector<512x128xf32> -> vector<512x128xf32>
    %7 = arith.addf %4, %6 : vector<512x128xf32>
    %c0_6 = arith.constant 0 : index
    %c0_7 = arith.constant 0 : index
    %8 = vector.load %arg4[%c0_6, %c0_7] : memref<512x128xf32, #tpu.memory_space<vmem>>, vector<512x128xf32>
    tpu.vector_store %arg4[%c0_6, %c0_7], %7 {strides = array<i32>} : memref<512x128xf32, #tpu.memory_space<vmem>>, vector<512x128xf32>,
    %c0_i32_8 = arith.constant 0 : i32
    %9 = arith.cmpi eq, %arg1, %c0_i32_8 : i32
    %10 = arith.extui %9 : i1 to i32
    %c0_i32_9 = arith.constant 0 : i32
    %11 = arith.cmpi ne, %10, %c0_i32_9 : i32
    scf.if %11 {
      %c0_10 = arith.constant 0 : index
      %c0_11 = arith.constant 0 : index
      %12 = vector.load %arg4[%c0_10, %c0_11] : memref<512x128xf32, #tpu.memory_space<vmem>>, vector<512x128xf32>
      %cst_12 = arith.constant dense<0.000000e+00> : vector<128xf32>
      %13 = vector.multi_reduction <add>, %12, %cst_12 [0] : vector<512x128xf32> to vector<128xf32>
      %14 = vector.shape_cast %13 : vector<128xf32> to vector<1x1x128xf32>
      %c0_13 = arith.constant 0 : index
      %c0_14 = arith.constant 0 : index
      %c0_15 = arith.constant 0 : index
      %15 = vector.load %arg5[%c0_13, %c0_14, %c0_15] : memref<1x1x128xf32, #tpu.memory_space<vmem>>, vector<1x1x128xf32>
      tpu.vector_store %arg5[%c0_13, %c0_14, %c0_15], %14 {strides = array<i32>} : memref<1x1x128xf32, #tpu.memory_space<vmem>>, vector<1x1x128xf32>,
      %16 = arith.mulf %12, %12 : vector<512x128xf32>
      %cst_16 = arith.constant dense<0.000000e+00> : vector<128xf32>
      %17 = vector.multi_reduction <add>, %16, %cst_16 [0] : vector<512x128xf32> to vector<128xf32>
      %18 = vector.shape_cast %17 : vector<128xf32> to vector<1x1x128xf32>
      %c0_17 = arith.constant 0 : index
      %c0_18 = arith.constant 0 : index
      %c0_19 = arith.constant 0 : index
      %19 = vector.load %arg6[%c0_17, %c0_18, %c0_19] : memref<1x1x128xf32, #tpu.memory_space<vmem>>, vector<1x1x128xf32>
      tpu.vector_store %arg6[%c0_17, %c0_18, %c0_19], %18 {strides = array<i32>} : memref<1x1x128xf32, #tpu.memory_space<vmem>>, vector<1x1x128xf32>,
    } else {
    }
    return
  }
  func.func @transform_0(%arg0: i32, %arg1: i32) -> (i32, i32) {
    %c0_i32 = arith.constant 0 : i32
    return %arg0, %arg1 : i32, i32
  }
  func.func @transform_1(%arg0: i32, %arg1: i32) -> (i32, i32) {
    %c0_i32 = arith.constant 0 : i32
    %c0_i32_0 = arith.constant 0 : i32
    return %arg1, %c0_i32 : i32, i32
  }
  func.func @transform_2(%arg0: i32, %arg1: i32) -> (i32, i32) {
    %c0_i32 = arith.constant 0 : i32
    %c0_i32_0 = arith.constant 0 : i32
    return %arg0, %c0_i32 : i32, i32
  }
  func.func @transform_3(%arg0: i32, %arg1: i32) -> (i32, i32, i32) {
    %c0_i32 = arith.constant 0 : i32
    %c0_i32_0 = arith.constant 0 : i32
    %c0_i32_1 = arith.constant 0 : i32
    return %arg0, %c0_i32, %c0_i32_0 : i32, i32, i32
  }
  func.func @transform_4(%arg0: i32, %arg1: i32) -> (i32, i32, i32) {
    %c0_i32 = arith.constant 0 : i32
    %c0_i32_0 = arith.constant 0 : i32
    %c0_i32_1 = arith.constant 0 : i32
    return %arg0, %c0_i32, %c0_i32_0 : i32, i32, i32
  }
}

module attributes {stable_mosaic.version = 11 : i64} {
  func.func @bn_lrelu_kernel(%arg0: i32, %arg1: memref<512x128xf32, #tpu.memory_space<vmem>>, %arg2: memref<1x128xf32, #tpu.memory_space<vmem>>, %arg3: memref<1x128xf32, #tpu.memory_space<vmem>>, %arg4: memref<512x128xf32, #tpu.memory_space<vmem>>) attributes {dimension_semantics = [#tpu.dimension_semantics<parallel>], iteration_bounds = array<i64: 1>, scalar_prefetch = 0 : i64, scratch_operands = 0 : i64, tpu.core_type = #tpu.core_type<tc>, window_params = [{transform_indices = @transform_0, window_bounds = array<i64: 512, 128>}, {pipeline_mode = #tpu.pipeline_mode<synchronous>, transform_indices = @transform_1, window_bounds = array<i64: 1, 128>}, {pipeline_mode = #tpu.pipeline_mode<synchronous>, transform_indices = @transform_2, window_bounds = array<i64: 1, 128>}, {transform_indices = @transform_3, window_bounds = array<i64: 512, 128>}]} {
    %c0 = arith.constant 0 : index
    %c0_0 = arith.constant 0 : index
    %0 = vector.load %arg1[%c0, %c0_0] : memref<512x128xf32, #tpu.memory_space<vmem>>, vector<512x128xf32>
    %c0_1 = arith.constant 0 : index
    %c0_2 = arith.constant 0 : index
    %1 = vector.load %arg2[%c0_1, %c0_2] : memref<1x128xf32, #tpu.memory_space<vmem>>, vector<1x128xf32>
    %2 = vector.broadcast %1 : vector<1x128xf32> to vector<512x128xf32>
    %3 = arith.mulf %0, %2 : vector<512x128xf32>
    %c0_3 = arith.constant 0 : index
    %c0_4 = arith.constant 0 : index
    %4 = vector.load %arg3[%c0_3, %c0_4] : memref<1x128xf32, #tpu.memory_space<vmem>>, vector<1x128xf32>
    %5 = vector.broadcast %4 : vector<1x128xf32> to vector<512x128xf32>
    %6 = arith.addf %3, %5 : vector<512x128xf32>
    %cst = arith.constant 0.000000e+00 : f32
    %7 = vector.broadcast %cst : f32 to vector<512x128xf32>
    %8 = arith.cmpf oge, %6, %7 : vector<512x128xf32>
    %cst_5 = arith.constant 1.000000e-01 : f32
    %9 = vector.broadcast %cst_5 : f32 to vector<512x128xf32>
    %10 = arith.mulf %9, %6 : vector<512x128xf32>
    %11 = arith.select %8, %6, %10 : vector<512x128xi1>, vector<512x128xf32>
    %c0_6 = arith.constant 0 : index
    %c0_7 = arith.constant 0 : index
    %12 = vector.load %arg4[%c0_6, %c0_7] : memref<512x128xf32, #tpu.memory_space<vmem>>, vector<512x128xf32>
    tpu.vector_store %arg4[%c0_6, %c0_7], %11 {strides = array<i32>} : memref<512x128xf32, #tpu.memory_space<vmem>>, vector<512x128xf32>,
    return
  }
  func.func @transform_0(%arg0: i32) -> (i32, i32) {
    %c0_i32 = arith.constant 0 : i32
    %c0_i32_0 = arith.constant 0 : i32
    return %arg0, %c0_i32 : i32, i32
  }
  func.func @transform_1(%arg0: i32) -> (i32, i32) {
    %c0_i32 = arith.constant 0 : i32
    %c0_i32_0 = arith.constant 0 : i32
    %c0_i32_1 = arith.constant 0 : i32
    return %c0_i32, %c0_i32_0 : i32, i32
  }
  func.func @transform_2(%arg0: i32) -> (i32, i32) {
    %c0_i32 = arith.constant 0 : i32
    %c0_i32_0 = arith.constant 0 : i32
    %c0_i32_1 = arith.constant 0 : i32
    return %c0_i32, %c0_i32_0 : i32, i32
  }
  func.func @transform_3(%arg0: i32) -> (i32, i32) {
    %c0_i32 = arith.constant 0 : i32
    %c0_i32_0 = arith.constant 0 : i32
    return %arg0, %c0_i32 : i32, i32
  }
}

</mosaic_0001>

<bundles_post_ra>
// kernel: _forward.3
= control target key start
LH: loop header
LB: loop body
LE: loop exit
PB: predicated region body
PF: predicated region fallthrough
CT: control target
= control target key end

     0   :  { %s1030_s0 = inlined_call_operand.vmem [shape: f32[512,128], index: 0, kind: input, shape index: {}, may-alias: {0,3}]   ;;  %s1031_s1 = inlined_call_operand.vmem [shape: f32[1,128], index: 1, kind: input, shape index: {}]   ;;  %s1032_s2 = inlined_call_operand.vmem [shape: f32[1,128], index: 2, kind: input, shape index: {}]   ;;  %s1033_s3 = inlined_call_operand.vmem [shape: f32[512,128], index: 3, kind: output, shape index: {}, may-alias: {0,3}]  }
   0x1   :  { %v14_v0 = vld [vmem:[%s1030_s0] sm:$0xff]  ;;  %v15_v4 = vld [vmem:[%s1030_s0 + $0x8] sm:$0xff]  ;;  %v16_v5 = vld [vmem:[%s1030_s0 + $0x10] sm:$0xff] }
   0x2   :  { %v508_v1 = vld [vmem:[%s1031_s1] ss:$0 sm:$0xff]  ;;  %v17_v6 = vld [vmem:[%s1030_s0 + $0x18] sm:$0xff]  ;;  %v19_v11 = vld [vmem:[%s1030_s0 + $0x28] sm:$0xff] }
   0x3   :  { %v513_v2 = vld [vmem:[%s1032_s2] ss:$0 sm:$0xff]  ;;  %v85_v3 = vmul.f32 %v508_v1, %v14_v0  ;;  %v86_v7 = vmul.f32 %v508_v1, %v15_v4  ;;  %v87_v8 = vmul.f32 %v508_v1, %v16_v5  ;;  %v88_v9 = vmul.f32 %v508_v1, %v17_v6  ;;  %v20_v12 = vld [vmem:[%s1030_s0 + $0x30] sm:$0xff]  ;;  %v21_v17 = vld [vmem:[%s1030_s0 + $0x38] sm:$0xff] }
   0x4   :  { %v18_v10 = vld [vmem:[%s1030_s0 + $0x20] sm:$0xff]  ;;  %v90_v15 = vmul.f32 %v508_v1, %v19_v11  ;;  %v91_v16 = vmul.f32 %v508_v1, %v20_v12  ;;  %v92_v21 = vmul.f32 %v508_v1, %v21_v17  ;;  %v23_v30 = vld [vmem:[%s1030_s0 + $0x48] sm:$0xff]  ;;  %v24_v31 = vld [vmem:[%s1030_s0 + $0x50] sm:$0xff] }
   0x5   :  { %v156_v13 = vadd.f32 %v513_v2, %v85_v3  ;;  %v89_v14 = vmul.f32 %v508_v1, %v18_v10  ;;  %v157_v18 = vadd.f32 %v513_v2, %v86_v7  ;;  %v158_v19 = vadd.f32 %v513_v2, %v87_v8  ;;  %v22_v25 = vld [vmem:[%s1030_s0 + $0x40] sm:$0xff] }
   0x6   :  { %v159_v20 = vadd.f32 %v513_v2, %v88_v9  ;;  %v161_v24 = vadd.f32 %v513_v2, %v90_v15  ;;  %v162_v37 = vadd.f32 %v513_v2, %v91_v16  ;;  %v163_v38 = vadd.f32 %v513_v2, %v92_v21 }
   0x7   :  { %vm220_vm0 = vcmp.ge.f32.partialorder %v156_v13, 0.0  ;;  %v284_v22 = vmul.f32 0.1, %v156_v13  ;;  %v160_v23 = vadd.f32 %v513_v2, %v89_v14  ;;  %vm221_vm1 = vcmp.ge.f32.partialorder %v157_v18, 0.0 }
   0x8   :  { %v285_v26 = vmul.f32 0.1, %v157_v18  ;;  %vm222_vm2 = vcmp.ge.f32.partialorder %v158_v19, 0.0  ;;  %v286_v27 = vmul.f32 0.1, %v158_v19  ;;  %vm223_vm3 = vcmp.ge.f32.partialorder %v159_v20, 0.0 }
   0x9   :  { %v348_v28 = vsel %vm220_vm0, %v156_v13, %v284_v22  ;;  %v287_v29 = vmul.f32 0.1, %v159_v20  ;;  %vm224_vm4 = vcmp.ge.f32.partialorder %v160_v23, 0.0  ;;  %v288_v34 = vmul.f32 0.1, %v160_v23 }
   0xa   :  { %412 = vst [vmem:[%s1033_s3] sm:$0xff] %v348_v28  ;;  %v349_v32 = vsel %vm221_vm1, %v157_v18, %v285_v26  ;;  %v350_v33 = vsel %vm222_vm2, %v158_v19, %v286_v27  ;;  %vm225_vm5 = vcmp.ge.f32.partialorder %v161_v24, 0.0  ;;  %v289_v36 = vmul.f32 0.1, %v161_v24 }
   0xb   :  { %413 = vst [vmem:[%s1033_s3 + $0x8] sm:$0xff] %v349_v32  ;;  %414 = vst [vmem:[%s1033_s3 + $0x10] sm:$0xff] %v350_v33  ;;  %v351_v35 = vsel %vm223_vm3, %v159_v20, %v287_v29  ;;  %v352_v39 = vsel %vm224_vm4, %v160_v23, %v288_v34  ;;  %v93_v40 = vmul.f32 %v508_v1, %v22_v25  ;;  %vm226_vm6 = vcmp.ge.f32.partialorder %v162_v37, 0.0 }
   0xc   :  { %415 = vst [vmem:[%s1033_s3 + $0x18] sm:$0xff] %v351_v35  ;;  %v94_v41 = vmul.f32 %v508_v1, %v23_v30  ;;  %v95_v42 = vmul.f32 %v508_v1, %v24_v31  ;;  %v353_v46 = vsel %vm225_vm5, %v161_v24, %v289_v36  ;;  %v290_v47 = vmul.f32 0.1, %v162_v37 }
   0xd   :  { %vm227_vm7 = vcmp.ge.f32.partialorder %v163_v38, 0.0  ;;  %v291_v48 = vmul.f32 0.1, %v163_v38  ;;  %v164_v49 = vadd.f32 %v513_v2, %v93_v40 }
   0xe   :  { %v165_v50 = vadd.f32 %v513_v2, %v94_v41  ;;  %v166_v51 = vadd.f32 %v513_v2, %v95_v42  ;;  %v354_v52 = vsel %vm226_vm6, %v162_v37, %v290_v47 }
   0xf   :  { %v355_v57 = vsel %vm227_vm7, %v163_v38, %v291_v48  ;;  %vm228_vm8 = vcmp.ge.f32.partialorder %v164_v49, 0.0  ;;  %v292_v58 = vmul.f32 0.1, %v164_v49 }
  0x10   :  { %vm229_vm9 = vcmp.ge.f32.partialorder %v165_v50, 0.0  ;;  %v293_v59 = vmul.f32 0.1, %v165_v50  ;;  %vm230_vm10 = vcmp.ge.f32.partialorder %v166_v51, 0.0  ;;  %v294_v60 = vmul.f32 0.1, %v166_v51 }
  0x11   :  { %v356_v62 = vsel %vm228_vm8, %v164_v49, %v292_v58 }
  0x12   :  { %v357_v6 = vsel %vm229_vm9, %v165_v50, %v293_v59  ;;  %v358_v7 = vsel %vm230_vm10, %v166_v51, %v294_v60 }
  0x13   :  { %v25_v43 = vld [vmem:[%s1030_s0 + $0x58] sm:$0xff]  ;;  %v26_v44 = vld [vmem:[%s1030_s0 + $0x60] sm:$0xff]  ;;  %v27_v45 = vld [vmem:[%s1030_s0 + $0x68] sm:$0xff] }
  0x14   :  { %416 = vst [vmem:[%s1033_s3 + $0x20] sm:$0xff] %v352_v39  ;;  %417 = vst [vmem:[%s1033_s3 + $0x28] sm:$0xff] %v353_v46  ;;  %v96_v53 = vmul.f32 %v508_v1, %v25_v43  ;;  %v97_v54 = vmul.f32 %v508_v1, %v26_v44  ;;  %v98_v55 = vmul.f32 %v508_v1, %v27_v45 }
  0x16   :  { %v167_v61 = vadd.f32 %v513_v2, %v96_v53  ;;  %v168_v63 = vadd.f32 %v513_v2, %v97_v54  ;;  %v169_v0 = vadd.f32 %v513_v2, %v98_v55 }
  0x18   :  { %vm231_vm11 = vcmp.ge.f32.partialorder %v167_v61, 0.0  ;;  %v295_v8 = vmul.f32 0.1, %v167_v61  ;;  %vm232_vm12 = vcmp.ge.f32.partialorder %v168_v63, 0.0  ;;  %v296_v11 = vmul.f32 0.1, %v168_v63 }
  0x19   :  { %vm233_vm13 = vcmp.ge.f32.partialorder %v169_v0, 0.0  ;;  %v297_v12 = vmul.f32 0.1, %v169_v0 }
  0x1a   :  { %v359_v13 = vsel %vm231_vm11, %v167_v61, %v295_v8  ;;  %v360_v19 = vsel %vm232_vm12, %v168_v63, %v296_v11 }
  0x1b   :  { %v28_v56 = vld [vmem:[%s1030_s0 + $0x70] sm:$0xff]  ;;  %v361_v20 = vsel %vm233_vm13, %v169_v0, %v297_v12 }
  0x1c   :  { %418 = vst [vmem:[%s1033_s3 + $0x30] sm:$0xff] %v354_v52  ;;  %419 = vst [vmem:[%s1033_s3 + $0x38] sm:$0xff] %v355_v57  ;;  %v99_v3 = vmul.f32 %v508_v1, %v28_v56 }
  0x1e   :  { %v170_v14 = vadd.f32 %v513_v2, %v99_v3 }
  0x20   :  { %vm234_vm14 = vcmp.ge.f32.partialorder %v170_v14, 0.0  ;;  %v298_v23 = vmul.f32 0.1, %v170_v14 }
  0x22   :  { %v362_v30 = vsel %vm234_vm14, %v170_v14, %v298_v23 }
  0x23   :  { %v29_v4 = vld [vmem:[%s1030_s0 + $0x78] sm:$0xff]  ;;  %v30_v5 = vld [vmem:[%s1030_s0 + $0x80] sm:$0xff] }
  0x24   :  { %420 = vst [vmem:[%s1033_s3 + $0x40] sm:$0xff] %v356_v62  ;;  %v100_v15 = vmul.f32 %v508_v1, %v29_v4  ;;  %v101_v16 = vmul.f32 %v508_v1, %v30_v5 }
  0x26   :  { %v171_v24 = vadd.f32 %v513_v2, %v100_v15  ;;  %v172_v25 = vadd.f32 %v513_v2, %v101_v16 }
  0x28   :  { %vm235_vm15 = vcmp.ge.f32.partialorder %v171_v24, 0.0  ;;  %v299_v31 = vmul.f32 0.1, %v171_v24  ;;  %vm236_vm0 = vcmp.ge.f32.partialorder %v172_v25, 0.0  ;;  %v300_v34 = vmul.f32 0.1, %v172_v25 }
  0x2a   :  { %v363_v36 = vsel %vm235_vm15, %v171_v24, %v299_v31  ;;  %v364_v41 = vsel %vm236_vm0, %v172_v25, %v300_v34 }
  0x2b   :  { %v31_v9 = vld [vmem:[%s1030_s0 + $0x88] sm:$0xff]  ;;  %v32_v10 = vld [vmem:[%s1030_s0 + $0x90] sm:$0xff] }
  0x2c   :  { %421 = vst [vmem:[%s1033_s3 + $0x48] sm:$0xff] %v357_v6  ;;  %422 = vst [vmem:[%s1033_s3 + $0x50] sm:$0xff] %v358_v7  ;;  %v102_v21 = vmul.f32 %v508_v1, %v31_v9  ;;  %v103_v22 = vmul.f32 %v508_v1, %v32_v10 }
  0x2e   :  { %v173_v26 = vadd.f32 %v513_v2, %v102_v21  ;;  %v174_v27 = vadd.f32 %v513_v2, %v103_v22 }
  0x30   :  { %vm237_vm1 = vcmp.ge.f32.partialorder %v173_v26, 0.0  ;;  %v301_v35 = vmul.f32 0.1, %v173_v26  ;;  %vm238_vm2 = vcmp.ge.f32.partialorder %v174_v27, 0.0  ;;  %v302_v37 = vmul.f32 0.1, %v174_v27 }
  0x32   :  { %v365_v42 = vsel %vm237_vm1, %v173_v26, %v301_v35  ;;  %v366_v48 = vsel %vm238_vm2, %v174_v27, %v302_v37 }
  0x33   :  { %v33_v17 = vld [vmem:[%s1030_s0 + $0x98] sm:$0xff]  ;;  %v34_v18 = vld [vmem:[%s1030_s0 + $0xa0] sm:$0xff] }
  0x34   :  { %423 = vst [vmem:[%s1033_s3 + $0x58] sm:$0xff] %v359_v13  ;;  %424 = vst [vmem:[%s1033_s3 + $0x60] sm:$0xff] %v360_v19  ;;  %v104_v28 = vmul.f32 %v508_v1, %v33_v17  ;;  %v105_v29 = vmul.f32 %v508_v1, %v34_v18 }
  0x35   :  { %425 = vst [vmem:[%s1033_s3 + $0x68] sm:$0xff] %v361_v20 }
  0x36   :  { %v175_v38 = vadd.f32 %v513_v2, %v104_v28  ;;  %v176_v39 = vadd.f32 %v513_v2, %v105_v29 }
  0x38   :  { %vm239_vm3 = vcmp.ge.f32.partialorder %v175_v38, 0.0  ;;  %v303_v49 = vmul.f32 0.1, %v175_v38  ;;  %vm240_vm4 = vcmp.ge.f32.partialorder %v176_v39, 0.0  ;;  %v304_v50 = vmul.f32 0.1, %v176_v39 }
  0x3a   :  { %v367_v54 = vsel %vm239_vm3, %v175_v38, %v303_v49  ;;  %v368_v60 = vsel %vm240_vm4, %v176_v39, %v304_v50 }
  0x3c   :  { %v35_v32 = vld [vmem:[%s1030_s0 + $0xa8] sm:$0xff]  ;;  %v36_v33 = vld [vmem:[%s1030_s0 + $0xb0] sm:$0xff] }
  0x3d   :  { %426 = vst [vmem:[%s1033_s3 + $0x70] sm:$0xff] %v362_v30  ;;  %v106_v43 = vmul.f32 %v508_v1, %v35_v32  ;;  %v107_v44 = vmul.f32 %v508_v1, %v36_v33 }
  0x3f   :  { %v177_v51 = vadd.f32 %v513_v2, %v106_v43  ;;  %v178_v52 = vadd.f32 %v513_v2, %v107_v44 }
  0x41   :  { %vm241_vm5 = vcmp.ge.f32.partialorder %v177_v51, 0.0  ;;  %v305_v61 = vmul.f32 0.1, %v177_v51  ;;  %vm242_vm6 = vcmp.ge.f32.partialorder %v178_v52, 0.0  ;;  %v306_v62 = vmul.f32 0.1, %v178_v52 }
  0x43   :  { %v369_v4 = vsel %vm241_vm5, %v177_v51, %v305_v61  ;;  %v370_v8 = vsel %vm242_vm6, %v178_v52, %v306_v62 }
  0x44   :  { %v37_v40 = vld [vmem:[%s1030_s0 + $0xb8] sm:$0xff] }
  0x45   :  { %427 = vst [vmem:[%s1033_s3 + $0x78] sm:$0xff] %v363_v36  ;;  %v108_v53 = vmul.f32 %v508_v1, %v37_v40 }
  0x47   :  { %v179_v63 = vadd.f32 %v513_v2, %v108_v53 }
  0x49   :  { %vm243_vm7 = vcmp.ge.f32.partialorder %v179_v63, 0.0  ;;  %v307_v9 = vmul.f32 0.1, %v179_v63 }
  0x4b   :  { %v371_v14 = vsel %vm243_vm7, %v179_v63, %v307_v9 }
  0x4c   :  { %v38_v45 = vld [vmem:[%s1030_s0 + $0xc0] sm:$0xff]  ;;  %v39_v46 = vld [vmem:[%s1030_s0 + $0xc8] sm:$0xff]  ;;  %v40_v47 = vld [vmem:[%s1030_s0 + $0xd0] sm:$0xff] }
  0x4d   :  { %428 = vst [vmem:[%s1033_s3 + $0x80] sm:$0xff] %v364_v41  ;;  %429 = vst [vmem:[%s1033_s3 + $0x88] sm:$0xff] %v365_v42  ;;  %v109_v55 = vmul.f32 %v508_v1, %v38_v45  ;;  %v110_v56 = vmul.f32 %v508_v1, %v39_v46  ;;  %v111_v57 = vmul.f32 %v508_v1, %v40_v47 }
  0x4e   :  { %430 = vst [vmem:[%s1033_s3 + $0x90] sm:$0xff] %v366_v48 }
  0x4f   :  { %v180_v0 = vadd.f32 %v513_v2, %v109_v55  ;;  %v181_v3 = vadd.f32 %v513_v2, %v110_v56  ;;  %v182_v5 = vadd.f32 %v513_v2, %v111_v57 }
  0x51   :  { %vm244_vm8 = vcmp.ge.f32.partialorder %v180_v0, 0.0  ;;  %v308_v12 = vmul.f32 0.1, %v180_v0  ;;  %vm245_vm9 = vcmp.ge.f32.partialorder %v181_v3, 0.0  ;;  %v309_v13 = vmul.f32 0.1, %v181_v3 }
  0x52   :  { %vm246_vm10 = vcmp.ge.f32.partialorder %v182_v5, 0.0  ;;  %v310_v15 = vmul.f32 0.1, %v182_v5 }
  0x53   :  { %v372_v19 = vsel %vm244_vm8, %v180_v0, %v308_v12  ;;  %v373_v20 = vsel %vm245_vm9, %v181_v3, %v309_v13 }
  0x54   :  { %v374_v26 = vsel %vm246_vm10, %v182_v5, %v310_v15 }
  0x55   :  { %v41_v58 = vld [vmem:[%s1030_s0 + $0xd8] sm:$0xff]  ;;  %v42_v59 = vld [vmem:[%s1030_s0 + $0xe0] sm:$0xff] }
  0x56   :  { %431 = vst [vmem:[%s1033_s3 + $0x98] sm:$0xff] %v367_v54  ;;  %432 = vst [vmem:[%s1033_s3 + $0xa0] sm:$0xff] %v368_v60  ;;  %v112_v6 = vmul.f32 %v508_v1, %v41_v58  ;;  %v113_v7 = vmul.f32 %v508_v1, %v42_v59 }
  0x57   :  { %433 = vst [vmem:[%s1033_s3 + $0xa8] sm:$0xff] %v369_v4 }
  0x58   :  { %v183_v16 = vadd.f32 %v513_v2, %v112_v6  ;;  %v184_v17 = vadd.f32 %v513_v2, %v113_v7 }
  0x5a   :  { %vm247_vm11 = vcmp.ge.f32.partialorder %v183_v16, 0.0  ;;  %v311_v27 = vmul.f32 0.1, %v183_v16  ;;  %vm248_vm12 = vcmp.ge.f32.partialorder %v184_v17, 0.0  ;;  %v312_v28 = vmul.f32 0.1, %v184_v17 }
  0x5c   :  { %v375_v32 = vsel %vm247_vm11, %v183_v16, %v311_v27  ;;  %v376_v38 = vsel %vm248_vm12, %v184_v17, %v312_v28 }
  0x5e   :  { %v43_v10 = vld [vmem:[%s1030_s0 + $0xe8] sm:$0xff]  ;;  %v44_v11 = vld [vmem:[%s1030_s0 + $0xf0] sm:$0xff] }
  0x5f   :  { %434 = vst [vmem:[%s1033_s3 + $0xb0] sm:$0xff] %v370_v8  ;;  %v114_v21 = vmul.f32 %v508_v1, %v43_v10  ;;  %v115_v22 = vmul.f32 %v508_v1, %v44_v11 }
  0x61   :  { %v185_v29 = vadd.f32 %v513_v2, %v114_v21  ;;  %v186_v30 = vadd.f32 %v513_v2, %v115_v22 }
  0x63   :  { %vm249_vm13 = vcmp.ge.f32.partialorder %v185_v29, 0.0  ;;  %v313_v39 = vmul.f32 0.1, %v185_v29  ;;  %vm250_vm14 = vcmp.ge.f32.partialorder %v186_v30, 0.0  ;;  %v314_v40 = vmul.f32 0.1, %v186_v30 }
  0x65   :  { %v377_v44 = vsel %vm249_vm13, %v185_v29, %v313_v39  ;;  %v378_v48 = vsel %vm250_vm14, %v186_v30, %v314_v40 }
  0x66   :  { %v45_v18 = vld [vmem:[%s1030_s0 + $0xf8] sm:$0xff] }
  0x67   :  { %435 = vst [vmem:[%s1033_s3 + $0xb8] sm:$0xff] %v371_v14  ;;  %v116_v31 = vmul.f32 %v508_v1, %v45_v18 }
  0x69   :  { %v187_v41 = vadd.f32 %v513_v2, %v116_v31 }
  0x6b   :  { %vm251_vm15 = vcmp.ge.f32.partialorder %v187_v41, 0.0  ;;  %v315_v49 = vmul.f32 0.1, %v187_v41 }
  0x6d   :  { %v379_v54 = vsel %vm251_vm15, %v187_v41, %v315_v49 }
  0x6e   :  { %v46_v23 = vld [vmem:[%s1030_s0 + $0x100] sm:$0xff]  ;;  %v47_v24 = vld [vmem:[%s1030_s0 + $0x108] sm:$0xff]  ;;  %v48_v25 = vld [vmem:[%s1030_s0 + $0x110] sm:$0xff] }
  0x6f   :  { %436 = vst [vmem:[%s1033_s3 + $0xc0] sm:$0xff] %v372_v19  ;;  %437 = vst [vmem:[%s1033_s3 + $0xc8] sm:$0xff] %v373_v20  ;;  %v117_v33 = vmul.f32 %v508_v1, %v46_v23  ;;  %v118_v34 = vmul.f32 %v508_v1, %v47_v24  ;;  %v119_v35 = vmul.f32 %v508_v1, %v48_v25 }
  0x70   :  { %438 = vst [vmem:[%s1033_s3 + $0xd0] sm:$0xff] %v374_v26 }
  0x71   :  { %v188_v42 = vadd.f32 %v513_v2, %v117_v33  ;;  %v189_v43 = vadd.f32 %v513_v2, %v118_v34  ;;  %v190_v45 = vadd.f32 %v513_v2, %v119_v35 }
  0x73   :  { %vm252_vm0 = vcmp.ge.f32.partialorder %v188_v42, 0.0  ;;  %v316_v52 = vmul.f32 0.1, %v188_v42  ;;  %vm253_vm1 = vcmp.ge.f32.partialorder %v189_v43, 0.0  ;;  %v317_v53 = vmul.f32 0.1, %v189_v43 }
  0x74   :  { %vm254_vm2 = vcmp.ge.f32.partialorder %v190_v45, 0.0  ;;  %v318_v55 = vmul.f32 0.1, %v190_v45 }
  0x75   :  { %v380_v59 = vsel %vm252_vm0, %v188_v42, %v316_v52  ;;  %v381_v60 = vsel %vm253_vm1, %v189_v43, %v317_v53 }
  0x76   :  { %v382_v4 = vsel %vm254_vm2, %v190_v45, %v318_v55 }
  0x77   :  { %v49_v36 = vld [vmem:[%s1030_s0 + $0x118] sm:$0xff]  ;;  %v50_v37 = vld [vmem:[%s1030_s0 + $0x120] sm:$0xff] }
  0x78   :  { %439 = vst [vmem:[%s1033_s3 + $0xd8] sm:$0xff] %v375_v32  ;;  %440 = vst [vmem:[%s1033_s3 + $0xe0] sm:$0xff] %v376_v38  ;;  %v120_v46 = vmul.f32 %v508_v1, %v49_v36  ;;  %v121_v47 = vmul.f32 %v508_v1, %v50_v37 }
  0x79   :  { %441 = vst [vmem:[%s1033_s3 + $0xe8] sm:$0xff] %v377_v44 }
  0x7a   :  { %v191_v56 = vadd.f32 %v513_v2, %v120_v46  ;;  %v192_v57 = vadd.f32 %v513_v2, %v121_v47 }
  0x7c   :  { %vm255_vm3 = vcmp.ge.f32.partialorder %v191_v56, 0.0  ;;  %v319_v5 = vmul.f32 0.1, %v191_v56  ;;  %vm256_vm4 = vcmp.ge.f32.partialorder %v192_v57, 0.0  ;;  %v320_v6 = vmul.f32 0.1, %v192_v57 }
  0x7e   :  { %v383_v10 = vsel %vm255_vm3, %v191_v56, %v319_v5  ;;  %v384_v16 = vsel %vm256_vm4, %v192_v57, %v320_v6 }
  0x80   :  { %v51_v50 = vld [vmem:[%s1030_s0 + $0x128] sm:$0xff]  ;;  %v52_v51 = vld [vmem:[%s1030_s0 + $0x130] sm:$0xff] }
  0x81   :  { %442 = vst [vmem:[%s1033_s3 + $0xf0] sm:$0xff] %v378_v48  ;;  %v122_v61 = vmul.f32 %v508_v1, %v51_v50  ;;  %v123_v62 = vmul.f32 %v508_v1, %v52_v51 }
  0x83   :  { %v193_v7 = vadd.f32 %v513_v2, %v122_v61  ;;  %v194_v8 = vadd.f32 %v513_v2, %v123_v62 }
  0x85   :  { %vm257_vm5 = vcmp.ge.f32.partialorder %v193_v7, 0.0  ;;  %v321_v17 = vmul.f32 0.1, %v193_v7  ;;  %vm258_vm6 = vcmp.ge.f32.partialorder %v194_v8, 0.0  ;;  %v322_v18 = vmul.f32 0.1, %v194_v8 }
  0x87   :  { %v385_v22 = vsel %vm257_vm5, %v193_v7, %v321_v17  ;;  %v386_v26 = vsel %vm258_vm6, %v194_v8, %v322_v18 }
  0x88   :  { %v53_v58 = vld [vmem:[%s1030_s0 + $0x138] sm:$0xff] }
  0x89   :  { %443 = vst [vmem:[%s1033_s3 + $0xf8] sm:$0xff] %v379_v54  ;;  %v124_v9 = vmul.f32 %v508_v1, %v53_v58 }
  0x8b   :  { %v195_v19 = vadd.f32 %v513_v2, %v124_v9 }
  0x8d   :  { %vm259_vm7 = vcmp.ge.f32.partialorder %v195_v19, 0.0  ;;  %v323_v27 = vmul.f32 0.1, %v195_v19 }
  0x8f   :  { %v387_v32 = vsel %vm259_vm7, %v195_v19, %v323_v27 }
  0x90   :  { %v54_v63 = vld [vmem:[%s1030_s0 + $0x140] sm:$0xff]  ;;  %v55_v0 = vld [vmem:[%s1030_s0 + $0x148] sm:$0xff]  ;;  %v56_v3 = vld [vmem:[%s1030_s0 + $0x150] sm:$0xff] }
  0x91   :  { %444 = vst [vmem:[%s1033_s3 + $0x100] sm:$0xff] %v380_v59  ;;  %445 = vst [vmem:[%s1033_s3 + $0x108] sm:$0xff] %v381_v60  ;;  %v125_v11 = vmul.f32 %v508_v1, %v54_v63  ;;  %v126_v12 = vmul.f32 %v508_v1, %v55_v0  ;;  %v127_v13 = vmul.f32 %v508_v1, %v56_v3 }
  0x92   :  { %446 = vst [vmem:[%s1033_s3 + $0x110] sm:$0xff] %v382_v4 }
  0x93   :  { %v196_v20 = vadd.f32 %v513_v2, %v125_v11  ;;  %v197_v21 = vadd.f32 %v513_v2, %v126_v12  ;;  %v198_v23 = vadd.f32 %v513_v2, %v127_v13 }
  0x95   :  { %vm260_vm8 = vcmp.ge.f32.partialorder %v196_v20, 0.0  ;;  %v324_v30 = vmul.f32 0.1, %v196_v20  ;;  %vm261_vm9 = vcmp.ge.f32.partialorder %v197_v21, 0.0  ;;  %v325_v31 = vmul.f32 0.1, %v197_v21 }
  0x96   :  { %vm262_vm10 = vcmp.ge.f32.partialorder %v198_v23, 0.0  ;;  %v326_v33 = vmul.f32 0.1, %v198_v23 }
  0x97   :  { %v388_v37 = vsel %vm260_vm8, %v196_v20, %v324_v30  ;;  %v389_v38 = vsel %vm261_vm9, %v197_v21, %v325_v31 }
  0x98   :  { %v390_v44 = vsel %vm262_vm10, %v198_v23, %v326_v33 }
  0x99   :  { %v57_v14 = vld [vmem:[%s1030_s0 + $0x158] sm:$0xff]  ;;  %v58_v15 = vld [vmem:[%s1030_s0 + $0x160] sm:$0xff] }
  0x9a   :  { %447 = vst [vmem:[%s1033_s3 + $0x118] sm:$0xff] %v383_v10  ;;  %448 = vst [vmem:[%s1033_s3 + $0x120] sm:$0xff] %v384_v16  ;;  %v128_v24 = vmul.f32 %v508_v1, %v57_v14  ;;  %v129_v25 = vmul.f32 %v508_v1, %v58_v15 }
  0x9b   :  { %449 = vst [vmem:[%s1033_s3 + $0x128] sm:$0xff] %v385_v22 }
  0x9c   :  { %v199_v34 = vadd.f32 %v513_v2, %v128_v24  ;;  %v200_v35 = vadd.f32 %v513_v2, %v129_v25 }
  0x9e   :  { %vm263_vm11 = vcmp.ge.f32.partialorder %v199_v34, 0.0  ;;  %v327_v45 = vmul.f32 0.1, %v199_v34  ;;  %vm264_vm12 = vcmp.ge.f32.partialorder %v200_v35, 0.0  ;;  %v328_v46 = vmul.f32 0.1, %v200_v35 }
  0xa0   :  { %v391_v50 = vsel %vm263_vm11, %v199_v34, %v327_v45  ;;  %v392_v56 = vsel %vm264_vm12, %v200_v35, %v328_v46 }
  0xa2   :  { %v59_v28 = vld [vmem:[%s1030_s0 + $0x168] sm:$0xff]  ;;  %v60_v29 = vld [vmem:[%s1030_s0 + $0x170] sm:$0xff] }
  0xa3   :  { %450 = vst [vmem:[%s1033_s3 + $0x130] sm:$0xff] %v386_v26  ;;  %v130_v39 = vmul.f32 %v508_v1, %v59_v28  ;;  %v131_v40 = vmul.f32 %v508_v1, %v60_v29 }
  0xa5   :  { %v201_v47 = vadd.f32 %v513_v2, %v130_v39  ;;  %v202_v48 = vadd.f32 %v513_v2, %v131_v40 }
  0xa7   :  { %vm265_vm13 = vcmp.ge.f32.partialorder %v201_v47, 0.0  ;;  %v329_v57 = vmul.f32 0.1, %v201_v47  ;;  %vm266_vm14 = vcmp.ge.f32.partialorder %v202_v48, 0.0  ;;  %v330_v58 = vmul.f32 0.1, %v202_v48 }
  0xa9   :  { %v393_v62 = vsel %vm265_vm13, %v201_v47, %v329_v57  ;;  %v394_v4 = vsel %vm266_vm14, %v202_v48, %v330_v58 }
  0xaa   :  { %v61_v36 = vld [vmem:[%s1030_s0 + $0x178] sm:$0xff] }
  0xab   :  { %451 = vst [vmem:[%s1033_s3 + $0x138] sm:$0xff] %v387_v32  ;;  %v132_v49 = vmul.f32 %v508_v1, %v61_v36 }
  0xad   :  { %v203_v59 = vadd.f32 %v513_v2, %v132_v49 }
  0xaf   :  { %vm267_vm15 = vcmp.ge.f32.partialorder %v203_v59, 0.0  ;;  %v331_v5 = vmul.f32 0.1, %v203_v59 }
  0xb1   :  { %v395_v10 = vsel %vm267_vm15, %v203_v59, %v331_v5 }
  0xb2   :  { %v62_v41 = vld [vmem:[%s1030_s0 + $0x180] sm:$0xff]  ;;  %v63_v42 = vld [vmem:[%s1030_s0 + $0x188] sm:$0xff]  ;;  %v64_v43 = vld [vmem:[%s1030_s0 + $0x190] sm:$0xff] }
  0xb3   :  { %452 = vst [vmem:[%s1033_s3 + $0x140] sm:$0xff] %v388_v37  ;;  %453 = vst [vmem:[%s1033_s3 + $0x148] sm:$0xff] %v389_v38  ;;  %v133_v51 = vmul.f32 %v508_v1, %v62_v41  ;;  %v134_v52 = vmul.f32 %v508_v1, %v63_v42  ;;  %v135_v53 = vmul.f32 %v508_v1, %v64_v43 }
  0xb4   :  { %454 = vst [vmem:[%s1033_s3 + $0x150] sm:$0xff] %v390_v44 }
  0xb5   :  { %v204_v60 = vadd.f32 %v513_v2, %v133_v51  ;;  %v205_v61 = vadd.f32 %v513_v2, %v134_v52  ;;  %v206_v63 = vadd.f32 %v513_v2, %v135_v53 }
  0xb7   :  { %vm268_vm0 = vcmp.ge.f32.partialorder %v204_v60, 0.0  ;;  %v332_v8 = vmul.f32 0.1, %v204_v60  ;;  %vm269_vm1 = vcmp.ge.f32.partialorder %v205_v61, 0.0  ;;  %v333_v9 = vmul.f32 0.1, %v205_v61 }
  0xb8   :  { %vm270_vm2 = vcmp.ge.f32.partialorder %v206_v63, 0.0  ;;  %v334_v11 = vmul.f32 0.1, %v206_v63 }
  0xb9   :  { %v396_v15 = vsel %vm268_vm0, %v204_v60, %v332_v8  ;;  %v397_v16 = vsel %vm269_vm1, %v205_v61, %v333_v9 }
  0xba   :  { %v398_v22 = vsel %vm270_vm2, %v206_v63, %v334_v11 }
  0xbb   :  { %v65_v54 = vld [vmem:[%s1030_s0 + $0x198] sm:$0xff]  ;;  %v66_v55 = vld [vmem:[%s1030_s0 + $0x1a0] sm:$0xff] }
  0xbc   :  { %455 = vst [vmem:[%s1033_s3 + $0x158] sm:$0xff] %v391_v50  ;;  %456 = vst [vmem:[%s1033_s3 + $0x160] sm:$0xff] %v392_v56  ;;  %v136_v0 = vmul.f32 %v508_v1, %v65_v54  ;;  %v137_v3 = vmul.f32 %v508_v1, %v66_v55 }
  0xbd   :  { %457 = vst [vmem:[%s1033_s3 + $0x168] sm:$0xff] %v393_v62 }
  0xbe   :  { %v207_v12 = vadd.f32 %v513_v2, %v136_v0  ;;  %v208_v13 = vadd.f32 %v513_v2, %v137_v3 }
  0xc0   :  { %vm271_vm3 = vcmp.ge.f32.partialorder %v207_v12, 0.0  ;;  %v335_v23 = vmul.f32 0.1, %v207_v12  ;;  %vm272_vm4 = vcmp.ge.f32.partialorder %v208_v13, 0.0  ;;  %v336_v24 = vmul.f32 0.1, %v208_v13 }
  0xc2   :  { %v399_v28 = vsel %vm271_vm3, %v207_v12, %v335_v23  ;;  %v400_v34 = vsel %vm272_vm4, %v208_v13, %v336_v24 }
  0xc4   :  { %v67_v6 = vld [vmem:[%s1030_s0 + $0x1a8] sm:$0xff]  ;;  %v68_v7 = vld [vmem:[%s1030_s0 + $0x1b0] sm:$0xff] }
  0xc5   :  { %458 = vst [vmem:[%s1033_s3 + $0x170] sm:$0xff] %v394_v4  ;;  %v138_v17 = vmul.f32 %v508_v1, %v67_v6  ;;  %v139_v18 = vmul.f32 %v508_v1, %v68_v7 }
  0xc7   :  { %v209_v25 = vadd.f32 %v513_v2, %v138_v17  ;;  %v210_v26 = vadd.f32 %v513_v2, %v139_v18 }
  0xc9   :  { %vm273_vm5 = vcmp.ge.f32.partialorder %v209_v25, 0.0  ;;  %v337_v35 = vmul.f32 0.1, %v209_v25  ;;  %vm274_vm6 = vcmp.ge.f32.partialorder %v210_v26, 0.0  ;;  %v338_v36 = vmul.f32 0.1, %v210_v26 }
  0xcb   :  { %v401_v40 = vsel %vm273_vm5, %v209_v25, %v337_v35  ;;  %v402_v44 = vsel %vm274_vm6, %v210_v26, %v338_v36 }
  0xcc   :  { %v69_v14 = vld [vmem:[%s1030_s0 + $0x1b8] sm:$0xff] }
  0xcd   :  { %459 = vst [vmem:[%s1033_s3 + $0x178] sm:$0xff] %v395_v10  ;;  %v140_v27 = vmul.f32 %v508_v1, %v69_v14 }
  0xcf   :  { %v211_v37 = vadd.f32 %v513_v2, %v140_v27 }
  0xd1   :  { %vm275_vm7 = vcmp.ge.f32.partialorder %v211_v37, 0.0  ;;  %v339_v45 = vmul.f32 0.1, %v211_v37 }
  0xd3   :  { %v403_v50 = vsel %vm275_vm7, %v211_v37, %v339_v45 }
  0xd4   :  { %v70_v19 = vld [vmem:[%s1030_s0 + $0x1c0] sm:$0xff]  ;;  %v71_v20 = vld [vmem:[%s1030_s0 + $0x1c8] sm:$0xff]  ;;  %v72_v21 = vld [vmem:[%s1030_s0 + $0x1d0] sm:$0xff] }
  0xd5   :  { %460 = vst [vmem:[%s1033_s3 + $0x180] sm:$0xff] %v396_v15  ;;  %461 = vst [vmem:[%s1033_s3 + $0x188] sm:$0xff] %v397_v16  ;;  %v141_v29 = vmul.f32 %v508_v1, %v70_v19  ;;  %v142_v30 = vmul.f32 %v508_v1, %v71_v20  ;;  %v143_v31 = vmul.f32 %v508_v1, %v72_v21 }
  0xd6   :  { %462 = vst [vmem:[%s1033_s3 + $0x190] sm:$0xff] %v398_v22 }
  0xd7   :  { %v212_v38 = vadd.f32 %v513_v2, %v141_v29  ;;  %v213_v39 = vadd.f32 %v513_v2, %v142_v30  ;;  %v214_v41 = vadd.f32 %v513_v2, %v143_v31 }
  0xd9   :  { %vm276_vm8 = vcmp.ge.f32.partialorder %v212_v38, 0.0  ;;  %v340_v48 = vmul.f32 0.1, %v212_v38  ;;  %vm277_vm9 = vcmp.ge.f32.partialorder %v213_v39, 0.0  ;;  %v341_v49 = vmul.f32 0.1, %v213_v39 }
  0xda   :  { %vm278_vm10 = vcmp.ge.f32.partialorder %v214_v41, 0.0  ;;  %v342_v51 = vmul.f32 0.1, %v214_v41 }
  0xdb   :  { %v404_v55 = vsel %vm276_vm8, %v212_v38, %v340_v48  ;;  %v405_v56 = vsel %vm277_vm9, %v213_v39, %v341_v49 }
  0xdc   :  { %v406_v59 = vsel %vm278_vm10, %v214_v41, %v342_v51 }
  0xdd   :  { %v73_v32 = vld [vmem:[%s1030_s0 + $0x1d8] sm:$0xff]  ;;  %v74_v33 = vld [vmem:[%s1030_s0 + $0x1e0] sm:$0xff] }
  0xde   :  { %463 = vst [vmem:[%s1033_s3 + $0x198] sm:$0xff] %v399_v28  ;;  %464 = vst [vmem:[%s1033_s3 + $0x1a0] sm:$0xff] %v400_v34  ;;  %v144_v42 = vmul.f32 %v508_v1, %v73_v32  ;;  %v145_v43 = vmul.f32 %v508_v1, %v74_v33 }
  0xdf   :  { %465 = vst [vmem:[%s1033_s3 + $0x1a8] sm:$0xff] %v401_v40 }
  0xe0   :  { %v215_v52 = vadd.f32 %v513_v2, %v144_v42  ;;  %v216_v53 = vadd.f32 %v513_v2, %v145_v43 }
  0xe2   :  { %vm279_vm11 = vcmp.ge.f32.partialorder %v215_v52, 0.0  ;;  %v343_v60 = vmul.f32 0.1, %v215_v52  ;;  %vm280_vm12 = vcmp.ge.f32.partialorder %v216_v53, 0.0  ;;  %v344_v61 = vmul.f32 0.1, %v216_v53 }
  0xe4   :  { %v407_v3 = vsel %vm279_vm11, %v215_v52, %v343_v60  ;;  %v408_v4 = vsel %vm280_vm12, %v216_v53, %v344_v61 }
  0xe6   :  { %v75_v46 = vld [vmem:[%s1030_s0 + $0x1e8] sm:$0xff]  ;;  %v76_v47 = vld [vmem:[%s1030_s0 + $0x1f0] sm:$0xff] }
  0xe7   :  { %466 = vst [vmem:[%s1033_s3 + $0x1b0] sm:$0xff] %v402_v44  ;;  %v146_v57 = vmul.f32 %v508_v1, %v75_v46  ;;  %v147_v58 = vmul.f32 %v508_v1, %v76_v47 }
  0xe9   :  { %v217_v62 = vadd.f32 %v513_v2, %v146_v57  ;;  %v218_v63 = vadd.f32 %v513_v2, %v147_v58 }
  0xeb   :  { %vm281_vm13 = vcmp.ge.f32.partialorder %v217_v62, 0.0  ;;  %v345_v5 = vmul.f32 0.1, %v217_v62  ;;  %vm282_vm14 = vcmp.ge.f32.partialorder %v218_v63, 0.0  ;;  %v346_v6 = vmul.f32 0.1, %v218_v63 }
  0xed   :  { %v409_v8 = vsel %vm281_vm13, %v217_v62, %v345_v5 }
  0xee   :  { %v77_v54 = vld [vmem:[%s1030_s0 + $0x1f8] sm:$0xff] }
  0xef   :  { %467 = vst [vmem:[%s1033_s3 + $0x1b8] sm:$0xff] %v403_v50  ;;  %468 = vst [vmem:[%s1033_s3 + $0x1c0] sm:$0xff] %v404_v55  ;;  %v148_v0 = vmul.f32 %v508_v1, %v77_v54  ;;  %v410_v1 = vsel %vm282_vm14, %v218_v63, %v346_v6 }
  0xf0   :  { %469 = vst [vmem:[%s1033_s3 + $0x1c8] sm:$0xff] %v405_v56  ;;  %470 = vst [vmem:[%s1033_s3 + $0x1d0] sm:$0xff] %v406_v59 }
  0xf1   :  { %471 = vst [vmem:[%s1033_s3 + $0x1d8] sm:$0xff] %v407_v3  ;;  %472 = vst [vmem:[%s1033_s3 + $0x1e0] sm:$0xff] %v408_v4  ;;  %v219_v7 = vadd.f32 %v513_v2, %v148_v0 }
  0xf2   :  { %473 = vst [vmem:[%s1033_s3 + $0x1e8] sm:$0xff] %v409_v8  ;;  %474 = vst [vmem:[%s1033_s3 + $0x1f0] sm:$0xff] %v410_v1 }
  0xf3   :  { %vm283_vm15 = vcmp.ge.f32.partialorder %v219_v7, 0.0  ;;  %v347_v9 = vmul.f32 0.1, %v219_v7 }
  0xf5   :  { %v411_v10 = vsel %vm283_vm15, %v219_v7, %v347_v9 }
  0xf6   :  { %475 = vst [vmem:[%s1033_s3 + $0x1f8] sm:$0xff] %v411_v10 }

// kernel: _forward.2
= control target key start
LH: loop header
LB: loop body
LE: loop exit
PB: predicated region body
PF: predicated region fallthrough
CT: control target
= control target key end

     0   :  { %s1919_s1 = inlined_call_operand.vmem [shape: bf16[128,128], index: 1, kind: input, shape index: {}]   ;;  %s1920_s0 = inlined_call_operand.vmem [shape: bf16[512,128], index: 0, kind: input, shape index: {}]   ;;  %s1921_s2 = inlined_call_operand.vmem [shape: f32[512,128], index: 2, kind: output, shape index: {0}]   ;;  %s1922_s3 = inlined_call_operand.vmem [shape: f32[1,1,128], index: 3, kind: output, shape index: {1}]   ;;  %s1923_s4 = inlined_call_operand.vmem [shape: f32[1,1,128], index: 4, kind: output, shape index: {2}]  }
   0x1   :  { %v1344_v0 = vld [vmem:[%s1919_s1 + $0x38] sm:$0xff]   ;;  %v1345_v1 = vld [vmem:[%s1919_s1 + $0x30] sm:$0xff]   ;;  %v1346_v2 = vld [vmem:[%s1919_s1 + $0x28] sm:$0xff]  }
   0x2   :  { %1247 = vmatprep.subr.bf16.mxu0 %v1344_v0  ;;  %1327 = vmatprep.subr.bf16.mxu1 %v1344_v0  ;;  %v1347_v3 = vld [vmem:[%s1919_s1 + $0x20] sm:$0xff]   ;;  %v1348_v5 = vld [vmem:[%s1919_s1 + $0x18] sm:$0xff]   ;;  %v1349_v6 = vld [vmem:[%s1919_s1 + $0x10] sm:$0xff]  }
   0x3   :  { %1248 = vmatpush3.bf16.msra.mxu0 %v1344_v0  ;;  %1335 = vmatpush3.bf16.msra.mxu1 %v1344_v0  ;;  %v1352_v4 = vld [vmem:[%s1920_s0] sm:$0xff]   ;;  %v1350_v7 = vld [vmem:[%s1919_s1 + $0x8] sm:$0xff]   ;;  %v1354_v11 = vld [vmem:[%s1920_s0 + $0x10] sm:$0xff]  }
   0x4   :  { %1249 = vmatprep.subr.bf16.mxu0 %v1345_v1  ;;  %1328 = vmatprep.subr.bf16.mxu1 %v1345_v1  ;;  %v1351_v8 = vld [vmem:[%s1919_s1] sm:$0xff]   ;;  %v1353_v10 = vld [vmem:[%s1920_s0 + $0x8] sm:$0xff]   ;;  %v1370_v13 = vld [vmem:[%s1920_s0 + $0x90] sm:$0xff]  }
   0x5   :  { %1263 = vmatprep.mubr.bf16.mxu0 %v1352_v4  ;;  %v1368_v9 = vld [vmem:[%s1920_s0 + $0x80] sm:$0xff]   ;;  %v1369_v12 = vld [vmem:[%s1920_s0 + $0x88] sm:$0xff]   ;;  %v1355_v14 = vld [vmem:[%s1920_s0 + $0x18] sm:$0xff]  }
   0x6   :  { %1295 = vmatprep.mubr.bf16.mxu1 %v1368_v9  ;;  %v1356_v15 = vld [vmem:[%s1920_s0 + $0x20] sm:$0xff]   ;;  %v1371_v16 = vld [vmem:[%s1920_s0 + $0x98] sm:$0xff]   ;;  %v1357_v18 = vld [vmem:[%s1920_s0 + $0x28] sm:$0xff]  }
   0x7   :  { %1250 = vmatpush3.bf16.msra.mxu0 %v1345_v1  ;;  %1336 = vmatpush3.bf16.msra.mxu1 %v1345_v1  ;;  %v1372_v17 = vld [vmem:[%s1920_s0 + $0xa0] sm:$0xff]   ;;  %v1373_v19 = vld [vmem:[%s1920_s0 + $0xa8] sm:$0xff]   ;;  %v1358_v20 = vld [vmem:[%s1920_s0 + $0x30] sm:$0xff]  }
   0x8   :  { %1251 = vmatprep.subr.bf16.mxu0 %v1346_v2  ;;  %1329 = vmatprep.subr.bf16.mxu1 %v1346_v2  ;;  %v1374_v21 = vld [vmem:[%s1920_s0 + $0xb0] sm:$0xff]   ;;  %v1359_v22 = vld [vmem:[%s1920_s0 + $0x38] sm:$0xff]   ;;  %v1360_v24 = vld [vmem:[%s1920_s0 + $0x40] sm:$0xff]  }
   0x9   :  { %v1375_v23 = vld [vmem:[%s1920_s0 + $0xb8] sm:$0xff]   ;;  %v1376_v25 = vld [vmem:[%s1920_s0 + $0xc0] sm:$0xff]   ;;  %v1361_v26 = vld [vmem:[%s1920_s0 + $0x48] sm:$0xff]  }
   0xa   :  { %v1377_v27 = vld [vmem:[%s1920_s0 + $0xc8] sm:$0xff]   ;;  %v1362_v28 = vld [vmem:[%s1920_s0 + $0x50] sm:$0xff]   ;;  %v1363_v30 = vld [vmem:[%s1920_s0 + $0x58] sm:$0xff]  }
   0xb   :  { %1252 = vmatpush3.bf16.msra.mxu0 %v1346_v2  ;;  %1337 = vmatpush3.bf16.msra.mxu1 %v1346_v2  ;;  %v1378_v29 = vld [vmem:[%s1920_s0 + $0xd0] sm:$0xff]   ;;  %v1379_v31 = vld [vmem:[%s1920_s0 + $0xd8] sm:$0xff]   ;;  %v1364_v32 = vld [vmem:[%s1920_s0 + $0x60] sm:$0xff]  }
   0xc   :  { %1253 = vmatprep.subr.bf16.mxu0 %v1347_v3  ;;  %1330 = vmatprep.subr.bf16.mxu1 %v1347_v3  ;;  %v1380_v33 = vld [vmem:[%s1920_s0 + $0xe0] sm:$0xff]   ;;  %v1365_v34 = vld [vmem:[%s1920_s0 + $0x68] sm:$0xff]   ;;  %v1366_v36 = vld [vmem:[%s1920_s0 + $0x70] sm:$0xff]  }
   0xd   :  { %v1381_v35 = vld [vmem:[%s1920_s0 + $0xe8] sm:$0xff]   ;;  %v1382_v37 = vld [vmem:[%s1920_s0 + $0xf0] sm:$0xff]   ;;  %v1367_v38 = vld [vmem:[%s1920_s0 + $0x78] sm:$0xff]  }
   0xe   :  { %v1383_v39 = vld [vmem:[%s1920_s0 + $0xf8] sm:$0xff]  }
   0xf   :  { %1254 = vmatpush3.bf16.msra.mxu0 %v1347_v3  ;;  %1338 = vmatpush3.bf16.msra.mxu1 %v1347_v3 }
  0x10   :  { %1255 = vmatprep.subr.bf16.mxu0 %v1348_v5  ;;  %1331 = vmatprep.subr.bf16.mxu1 %v1348_v5 }
  0x13   :  { %1256 = vmatpush3.bf16.msra.mxu0 %v1348_v5  ;;  %1339 = vmatpush3.bf16.msra.mxu1 %v1348_v5 }
  0x14   :  { %1257 = vmatprep.subr.bf16.mxu0 %v1349_v6  ;;  %1332 = vmatprep.subr.bf16.mxu1 %v1349_v6 }
  0x17   :  { %1258 = vmatpush3.bf16.msra.mxu0 %v1349_v6  ;;  %1340 = vmatpush3.bf16.msra.mxu1 %v1349_v6 }
  0x18   :  { %1259 = vmatprep.subr.bf16.mxu0 %v1350_v7  ;;  %1333 = vmatprep.subr.bf16.mxu1 %v1350_v7 }
  0x1b   :  { %1260 = vmatpush3.bf16.msra.mxu0 %v1350_v7  ;;  %1341 = vmatpush3.bf16.msra.mxu1 %v1350_v7 }
  0x1c   :  { %1261 = vmatprep.subr.bf16.mxu0 %v1351_v8  ;;  %1334 = vmatprep.subr.bf16.mxu1 %v1351_v8 }
  0x1f   :  { %1262 = vmatpush3.bf16.msra.mxu0 %v1351_v8  ;;  %1342 = vmatpush3.bf16.msra.mxu1 %v1351_v8 }
  0x22   :  { %1264 = vmatmul.mubr.bf16.vlgmr.msra.gmra.mxu0 %v1353_v10  ;;  %1296 = vmatmul.mubr.bf16.vlgmr.msra.gmra.mxu1 %v1369_v12 }
  0x23   :  { %1267 = vmatprep.mubr.bf16.mxu0 %v1354_v11  ;;  %1299 = vmatprep.mubr.bf16.mxu1 %v1370_v13 }
  0x2a   :  { %1268 = vmatmul.mubr.bf16.gmra.mxu0 %v1355_v14  ;;  %1300 = vmatmul.mubr.bf16.gmra.mxu1 %v1371_v16 }
  0x2b   :  { %1271 = vmatprep.mubr.bf16.mxu0 %v1356_v15  ;;  %1303 = vmatprep.mubr.bf16.mxu1 %v1372_v17 }
  0x32   :  { %1272 = vmatmul.mubr.bf16.gmra.mxu0 %v1357_v18  ;;  %1304 = vmatmul.mubr.bf16.gmra.mxu1 %v1373_v19 }
  0x33   :  { %1275 = vmatprep.mubr.bf16.mxu0 %v1358_v20  ;;  %1307 = vmatprep.mubr.bf16.mxu1 %v1374_v21 }
  0x3a   :  { %1276 = vmatmul.mubr.bf16.gmra.mxu0 %v1359_v22  ;;  %1308 = vmatmul.mubr.bf16.gmra.mxu1 %v1375_v23 }
  0x3b   :  { %1279 = vmatprep.mubr.bf16.mxu0 %v1360_v24  ;;  %1311 = vmatprep.mubr.bf16.mxu1 %v1376_v25 }
  0x42   :  { %1280 = vmatmul.mubr.bf16.gmra.mxu0 %v1361_v26  ;;  %1312 = vmatmul.mubr.bf16.gmra.mxu1 %v1377_v27 }
  0x43   :  { %1283 = vmatprep.mubr.bf16.mxu0 %v1362_v28  ;;  %1315 = vmatprep.mubr.bf16.mxu1 %v1378_v29 }
  0x4a   :  { %1284 = vmatmul.mubr.bf16.gmra.mxu0 %v1363_v30  ;;  %1316 = vmatmul.mubr.bf16.gmra.mxu1 %v1379_v31 }
  0x4b   :  { %1287 = vmatprep.mubr.bf16.mxu0 %v1364_v32  ;;  %1319 = vmatprep.mubr.bf16.mxu1 %v1380_v33 }
  0x52   :  { %1288 = vmatmul.mubr.bf16.gmra.mxu0 %v1365_v34  ;;  %1320 = vmatmul.mubr.bf16.gmra.mxu1 %v1381_v35 }
  0x53   :  { %1291 = vmatprep.mubr.bf16.mxu0 %v1366_v36  ;;  %1323 = vmatprep.mubr.bf16.mxu1 %v1382_v37 }
  0x5a   :  { %1292 = vmatmul.mubr.bf16.gmra.mxu0 %v1367_v38  ;;  %1324 = vmatmul.mubr.bf16.gmra.mxu1 %v1383_v39 }
  0xe2   :  { %v1265_v40 = vpop.f32.mrf.mxu0  ;;  %v1529_v41 = vpop.f32.mrf.mxu1 }
  0xe3   :  { %822 = vst [vmem:[%s1921_s2 + $0x10] sm:$0xff] %v1265_v40  ;;  %854 = vst [vmem:[%s1921_s2 + $0x110] sm:$0xff] %v1529_v41  ;;  %v1023_v55 = vmul.f32 %v1265_v40, %v1265_v40 }
  0xe4   :  { %v501_v42 = vpop.f32.mrf.mxu0  ;;  %v1531_v43 = vpop.f32.mrf.mxu1 }
  0xe5   :  { %820 = vst [vmem:[%s1921_s2] sm:$0xff] %v501_v42  ;;  %852 = vst [vmem:[%s1921_s2 + $0x100] sm:$0xff] %v1531_v43  ;;  %v1021_v50 = vmul.f32 %v501_v42, %v501_v42 }
  0xe6   :  { %v1266_v44 = vpop.f32.mrf.mxu0  ;;  %v1540_v45 = vpop.f32.mrf.mxu1 }
  0xe7   :  { %823 = vst [vmem:[%s1921_s2 + $0x18] sm:$0xff] %v1266_v44  ;;  %855 = vst [vmem:[%s1921_s2 + $0x118] sm:$0xff] %v1540_v45  ;;  %v1024_v60 = vmul.f32 %v1266_v44, %v1266_v44 }
  0xe8   :  { %v504_v46 = vpop.f32.mrf.mxu0  ;;  %v1549_v47 = vpop.f32.mrf.mxu1 }
  0xe9   :  { %821 = vst [vmem:[%s1921_s2 + $0x8] sm:$0xff] %v504_v46  ;;  %v951_v51 = vadd.f32 %v504_v46, %v501_v42  ;;  %v1022_v52 = vmul.f32 %v504_v46, %v504_v46  ;;  %853 = vst [vmem:[%s1921_s2 + $0x108] sm:$0xff] %v1549_v47 }
  0xea   :  { %v1269_v48 = vpop.f32.mrf.mxu0  ;;  %v1558_v49 = vpop.f32.mrf.mxu1 }
  0xeb   :  { %v952_v56 = vadd.f32 %v1265_v40, %v951_v51  ;;  %v1085_v57 = vadd.f32 %v1022_v52, %v1021_v50  ;;  %826 = vst [vmem:[%s1921_s2 + $0x30] sm:$0xff] %v1269_v48  ;;  %858 = vst [vmem:[%s1921_s2 + $0x130] sm:$0xff] %v1558_v49  ;;  %v1027_v11 = vmul.f32 %v1269_v48, %v1269_v48 }
  0xec   :  { %v517_v53 = vpop.f32.mrf.mxu0  ;;  %v1567_v54 = vpop.f32.mrf.mxu1 }
  0xed   :  { %v1086_v61 = vadd.f32 %v1085_v57, %v1023_v55  ;;  %824 = vst [vmem:[%s1921_s2 + $0x20] sm:$0xff] %v517_v53  ;;  %v953_v62 = vadd.f32 %v1266_v44, %v952_v56  ;;  %856 = vst [vmem:[%s1921_s2 + $0x120] sm:$0xff] %v1567_v54  ;;  %v1025_v2 = vmul.f32 %v517_v53, %v517_v53 }
  0xee   :  { %v1270_v58 = vpop.f32.mrf.mxu0  ;;  %v1576_v59 = vpop.f32.mrf.mxu1 }
  0xef   :  { %v954_v1 = vadd.f32 %v953_v62, %v517_v53  ;;  %v1087_v3 = vadd.f32 %v1086_v61, %v1024_v60  ;;  %827 = vst [vmem:[%s1921_s2 + $0x38] sm:$0xff] %v1270_v58  ;;  %859 = vst [vmem:[%s1921_s2 + $0x138] sm:$0xff] %v1576_v59  ;;  %v1028_v16 = vmul.f32 %v1270_v58, %v1270_v58 }
  0xf0   :  { %v520_v63 = vpop.f32.mrf.mxu0  ;;  %v1585_v0 = vpop.f32.mrf.mxu1 }
  0xf1   :  { %v1088_v6 = vadd.f32 %v1087_v3, %v1025_v2  ;;  %825 = vst [vmem:[%s1921_s2 + $0x28] sm:$0xff] %v520_v63  ;;  %v955_v7 = vadd.f32 %v954_v1, %v520_v63  ;;  %v1026_v8 = vmul.f32 %v520_v63, %v520_v63  ;;  %857 = vst [vmem:[%s1921_s2 + $0x128] sm:$0xff] %v1585_v0 }
  0xf2   :  { %v1273_v4 = vpop.f32.mrf.mxu0  ;;  %v1594_v5 = vpop.f32.mrf.mxu1 }
  0xf3   :  { %v956_v12 = vadd.f32 %v1269_v48, %v955_v7  ;;  %v1089_v13 = vadd.f32 %v1088_v6, %v1026_v8  ;;  %830 = vst [vmem:[%s1921_s2 + $0x50] sm:$0xff] %v1273_v4  ;;  %862 = vst [vmem:[%s1921_s2 + $0x150] sm:$0xff] %v1594_v5  ;;  %v1031_v31 = vmul.f32 %v1273_v4, %v1273_v4 }
  0xf4   :  { %v533_v9 = vpop.f32.mrf.mxu0  ;;  %v1603_v10 = vpop.f32.mrf.mxu1 }
  0xf5   :  { %v1090_v17 = vadd.f32 %v1089_v13, %v1027_v11  ;;  %828 = vst [vmem:[%s1921_s2 + $0x40] sm:$0xff] %v533_v9  ;;  %v957_v18 = vadd.f32 %v1270_v58, %v956_v12  ;;  %860 = vst [vmem:[%s1921_s2 + $0x140] sm:$0xff] %v1603_v10  ;;  %v1029_v22 = vmul.f32 %v533_v9, %v533_v9 }
  0xf6   :  { %v1274_v14 = vpop.f32.mrf.mxu0  ;;  %v1612_v15 = vpop.f32.mrf.mxu1 }
  0xf7   :  { %v958_v21 = vadd.f32 %v957_v18, %v533_v9  ;;  %v1091_v23 = vadd.f32 %v1090_v17, %v1028_v16  ;;  %831 = vst [vmem:[%s1921_s2 + $0x58] sm:$0xff] %v1274_v14  ;;  %863 = vst [vmem:[%s1921_s2 + $0x158] sm:$0xff] %v1612_v15  ;;  %v1032_v36 = vmul.f32 %v1274_v14, %v1274_v14 }
  0xf8   :  { %v536_v19 = vpop.f32.mrf.mxu0  ;;  %v1621_v20 = vpop.f32.mrf.mxu1 }
  0xf9   :  { %v1092_v26 = vadd.f32 %v1091_v23, %v1029_v22  ;;  %829 = vst [vmem:[%s1921_s2 + $0x48] sm:$0xff] %v536_v19  ;;  %v959_v27 = vadd.f32 %v958_v21, %v536_v19  ;;  %v1030_v28 = vmul.f32 %v536_v19, %v536_v19  ;;  %861 = vst [vmem:[%s1921_s2 + $0x148] sm:$0xff] %v1621_v20 }
  0xfa   :  { %v1277_v24 = vpop.f32.mrf.mxu0  ;;  %v1630_v25 = vpop.f32.mrf.mxu1 }
  0xfb   :  { %v960_v32 = vadd.f32 %v1273_v4, %v959_v27  ;;  %v1093_v33 = vadd.f32 %v1092_v26, %v1030_v28  ;;  %834 = vst [vmem:[%s1921_s2 + $0x70] sm:$0xff] %v1277_v24  ;;  %866 = vst [vmem:[%s1921_s2 + $0x170] sm:$0xff] %v1630_v25  ;;  %v1035_v57 = vmul.f32 %v1277_v24, %v1277_v24 }
  0xfc   :  { %v549_v29 = vpop.f32.mrf.mxu0  ;;  %v1639_v30 = vpop.f32.mrf.mxu1 }
  0xfd   :  { %v1094_v37 = vadd.f32 %v1093_v33, %v1031_v31  ;;  %832 = vst [vmem:[%s1921_s2 + $0x60] sm:$0xff] %v549_v29  ;;  %v961_v38 = vadd.f32 %v1274_v14, %v960_v32  ;;  %864 = vst [vmem:[%s1921_s2 + $0x160] sm:$0xff] %v1639_v30  ;;  %v1033_v44 = vmul.f32 %v549_v29, %v549_v29 }
  0xfe   :  { %v1278_v34 = vpop.f32.mrf.mxu0  ;;  %v1648_v35 = vpop.f32.mrf.mxu1 }
  0xff   :  { %v962_v42 = vadd.f32 %v961_v38, %v549_v29  ;;  %v1095_v46 = vadd.f32 %v1094_v37, %v1032_v36  ;;  %835 = vst [vmem:[%s1921_s2 + $0x78] sm:$0xff] %v1278_v34  ;;  %867 = vst [vmem:[%s1921_s2 + $0x178] sm:$0xff] %v1648_v35  ;;  %v1036_v63 = vmul.f32 %v1278_v34, %v1278_v34 }
 0x100   :  { %v552_v39 = vpop.f32.mrf.mxu0  ;;  %v1657_v40 = vpop.f32.mrf.mxu1 }
 0x101   :  { %v1096_v51 = vadd.f32 %v1095_v46, %v1033_v44  ;;  %833 = vst [vmem:[%s1921_s2 + $0x68] sm:$0xff] %v552_v39  ;;  %v963_v52 = vadd.f32 %v962_v42, %v552_v39  ;;  %v1034_v53 = vmul.f32 %v552_v39, %v552_v39  ;;  %865 = vst [vmem:[%s1921_s2 + $0x168] sm:$0xff] %v1657_v40 }
 0x102   :  { %v1281_v48 = vpop.f32.mrf.mxu0  ;;  %v1666_v50 = vpop.f32.mrf.mxu1 }
 0x103   :  { %v964_v58 = vadd.f32 %v1277_v24, %v963_v52  ;;  %v1097_v60 = vadd.f32 %v1096_v51, %v1034_v53  ;;  %838 = vst [vmem:[%s1921_s2 + $0x90] sm:$0xff] %v1281_v48  ;;  %870 = vst [vmem:[%s1921_s2 + $0x190] sm:$0xff] %v1666_v50  ;;  %v1039_v18 = vmul.f32 %v1281_v48, %v1281_v48 }
 0x104   :  { %v565_v55 = vpop.f32.mrf.mxu0  ;;  %v1675_v56 = vpop.f32.mrf.mxu1 }
 0x105   :  { %v1098_v1 = vadd.f32 %v1097_v60, %v1035_v57  ;;  %836 = vst [vmem:[%s1921_s2 + $0x80] sm:$0xff] %v565_v55  ;;  %v965_v2 = vadd.f32 %v1278_v34, %v964_v58  ;;  %868 = vst [vmem:[%s1921_s2 + $0x180] sm:$0xff] %v1675_v56  ;;  %v1037_v7 = vmul.f32 %v565_v55, %v565_v55 }
 0x106   :  { %v1282_v61 = vpop.f32.mrf.mxu0  ;;  %v1684_v62 = vpop.f32.mrf.mxu1 }
 0x107   :  { %v966_v6 = vadd.f32 %v965_v2, %v565_v55  ;;  %v1099_v8 = vadd.f32 %v1098_v1, %v1036_v63  ;;  %839 = vst [vmem:[%s1921_s2 + $0x98] sm:$0xff] %v1282_v61  ;;  %871 = vst [vmem:[%s1921_s2 + $0x198] sm:$0xff] %v1684_v62  ;;  %v1040_v24 = vmul.f32 %v1282_v61, %v1282_v61 }
 0x108   :  { %v568_v3 = vpop.f32.mrf.mxu0  ;;  %v1693_v4 = vpop.f32.mrf.mxu1 }
 0x109   :  { %v1100_v12 = vadd.f32 %v1099_v8, %v1037_v7  ;;  %837 = vst [vmem:[%s1921_s2 + $0x88] sm:$0xff] %v568_v3  ;;  %v967_v13 = vadd.f32 %v966_v6, %v568_v3  ;;  %v1038_v14 = vmul.f32 %v568_v3, %v568_v3  ;;  %869 = vst [vmem:[%s1921_s2 + $0x188] sm:$0xff] %v1693_v4 }
 0x10a   :  { %v1285_v9 = vpop.f32.mrf.mxu0  ;;  %v1702_v11 = vpop.f32.mrf.mxu1 }
 0x10b   :  { %v968_v19 = vadd.f32 %v1281_v48, %v967_v13  ;;  %v1101_v21 = vadd.f32 %v1100_v12, %v1038_v14  ;;  %842 = vst [vmem:[%s1921_s2 + $0xb0] sm:$0xff] %v1285_v9  ;;  %874 = vst [vmem:[%s1921_s2 + $0x1b0] sm:$0xff] %v1702_v11  ;;  %v1043_v46 = vmul.f32 %v1285_v9, %v1285_v9 }
 0x10c   :  { %v581_v16 = vpop.f32.mrf.mxu0  ;;  %v1711_v17 = vpop.f32.mrf.mxu1 }
 0x10d   :  { %v1102_v26 = vadd.f32 %v1101_v21, %v1039_v18  ;;  %840 = vst [vmem:[%s1921_s2 + $0xa0] sm:$0xff] %v581_v16  ;;  %v969_v27 = vadd.f32 %v1282_v61, %v968_v19  ;;  %872 = vst [vmem:[%s1921_s2 + $0x1a0] sm:$0xff] %v1711_v17  ;;  %v1041_v32 = vmul.f32 %v581_v16, %v581_v16 }
 0x10e   :  { %v1286_v22 = vpop.f32.mrf.mxu0  ;;  %v1720_v23 = vpop.f32.mrf.mxu1 }
 0x10f   :  { %v970_v31 = vadd.f32 %v969_v27, %v581_v16  ;;  %v1103_v33 = vadd.f32 %v1102_v26, %v1040_v24  ;;  %843 = vst [vmem:[%s1921_s2 + $0xb8] sm:$0xff] %v1286_v22  ;;  %875 = vst [vmem:[%s1921_s2 + $0x1b8] sm:$0xff] %v1720_v23  ;;  %v1044_v55 = vmul.f32 %v1286_v22, %v1286_v22 }
 0x110   :  { %v584_v28 = vpop.f32.mrf.mxu0  ;;  %v1729_v29 = vpop.f32.mrf.mxu1 }
 0x111   :  { %v1104_v37 = vadd.f32 %v1103_v33, %v1041_v32  ;;  %841 = vst [vmem:[%s1921_s2 + $0xa8] sm:$0xff] %v584_v28  ;;  %v971_v38 = vadd.f32 %v970_v31, %v584_v28  ;;  %v1042_v39 = vmul.f32 %v584_v28, %v584_v28  ;;  %873 = vst [vmem:[%s1921_s2 + $0x1a8] sm:$0xff] %v1729_v29 }
 0x112   :  { %v1289_v34 = vpop.f32.mrf.mxu0  ;;  %v1738_v36 = vpop.f32.mrf.mxu1 }
 0x113   :  { %v972_v48 = vadd.f32 %v1285_v9, %v971_v38  ;;  %v1105_v51 = vadd.f32 %v1104_v37, %v1042_v39  ;;  %846 = vst [vmem:[%s1921_s2 + $0xd0] sm:$0xff] %v1289_v34  ;;  %878 = vst [vmem:[%s1921_s2 + $0x1d0] sm:$0xff] %v1738_v36  ;;  %v1047_v14 = vmul.f32 %v1289_v34, %v1289_v34 }
 0x114   :  { %v597_v42 = vpop.f32.mrf.mxu0  ;;  %v1747_v44 = vpop.f32.mrf.mxu1 }
 0x115   :  { %v1106_v57 = vadd.f32 %v1105_v51, %v1043_v46  ;;  %844 = vst [vmem:[%s1921_s2 + $0xc0] sm:$0xff] %v597_v42  ;;  %v973_v58 = vadd.f32 %v1286_v22, %v972_v48  ;;  %876 = vst [vmem:[%s1921_s2 + $0x1c0] sm:$0xff] %v1747_v44  ;;  %v1045_v1 = vmul.f32 %v597_v42, %v597_v42 }
 0x116   :  { %v1290_v52 = vpop.f32.mrf.mxu0  ;;  %v1756_v53 = vpop.f32.mrf.mxu1 }
 0x117   :  { %v974_v63 = vadd.f32 %v973_v58, %v597_v42  ;;  %v1107_v2 = vadd.f32 %v1106_v57, %v1044_v55  ;;  %847 = vst [vmem:[%s1921_s2 + $0xd8] sm:$0xff] %v1290_v52  ;;  %879 = vst [vmem:[%s1921_s2 + $0x1d8] sm:$0xff] %v1756_v53  ;;  %v1048_v22 = vmul.f32 %v1290_v52, %v1290_v52 }
 0x118   :  { %v600_v60 = vpop.f32.mrf.mxu0  ;;  %v1765_v61 = vpop.f32.mrf.mxu1  ;;  %v1053_v55 = vmul.f32 %v1531_v43, %v1531_v43 }
 0x119   :  { %v1108_v7 = vadd.f32 %v1107_v2, %v1045_v1  ;;  %845 = vst [vmem:[%s1921_s2 + $0xc8] sm:$0xff] %v600_v60  ;;  %v975_v8 = vadd.f32 %v974_v63, %v600_v60  ;;  %v1046_v9 = vmul.f32 %v600_v60, %v600_v60  ;;  %877 = vst [vmem:[%s1921_s2 + $0x1c8] sm:$0xff] %v1765_v61 }
 0x11a   :  { %v1293_v3 = vpop.f32.mrf.mxu0  ;;  %v1774_v6 = vpop.f32.mrf.mxu1  ;;  %v1054_v63 = vmul.f32 %v1549_v47, %v1549_v47  ;;  %v1055_v2 = vmul.f32 %v1529_v41, %v1529_v41 }
 0x11b   :  { %v976_v16 = vadd.f32 %v1289_v34, %v975_v8  ;;  %v1109_v18 = vadd.f32 %v1108_v7, %v1046_v9  ;;  %850 = vst [vmem:[%s1921_s2 + $0xf0] sm:$0xff] %v1293_v3  ;;  %882 = vst [vmem:[%s1921_s2 + $0x1f0] sm:$0xff] %v1774_v6  ;;  %v1051_v39 = vmul.f32 %v1293_v3, %v1293_v3 }
 0x11c   :  { %v613_v12 = vpop.f32.mrf.mxu0  ;;  %v1783_v13 = vpop.f32.mrf.mxu1  ;;  %v1056_v8 = vmul.f32 %v1540_v45, %v1540_v45 }
 0x11d   :  { %v1110_v24 = vadd.f32 %v1109_v18, %v1047_v14  ;;  %848 = vst [vmem:[%s1921_s2 + $0xe0] sm:$0xff] %v613_v12  ;;  %v977_v26 = vadd.f32 %v1290_v52, %v976_v16  ;;  %880 = vst [vmem:[%s1921_s2 + $0x1e0] sm:$0xff] %v1783_v13  ;;  %v1049_v32 = vmul.f32 %v613_v12, %v613_v12 }
 0x11e   :  { %v1294_v19 = vpop.f32.mrf.mxu0  ;;  %v1792_v21 = vpop.f32.mrf.mxu1  ;;  %v1057_v14 = vmul.f32 %v1567_v54, %v1567_v54 }
 0x11f   :  { %v978_v31 = vadd.f32 %v977_v26, %v613_v12  ;;  %v1111_v33 = vadd.f32 %v1110_v24, %v1048_v22  ;;  %851 = vst [vmem:[%s1921_s2 + $0xf8] sm:$0xff] %v1294_v19  ;;  %883 = vst [vmem:[%s1921_s2 + $0x1f8] sm:$0xff] %v1792_v21  ;;  %v1052_v48 = vmul.f32 %v1294_v19, %v1294_v19 }
 0x120   :  { %v616_v27 = vpop.f32.mrf.mxu0  ;;  %v1801_v28 = vpop.f32.mrf.mxu1 }
 0x121   :  { %v1112_v34 = vadd.f32 %v1111_v33, %v1049_v32  ;;  %849 = vst [vmem:[%s1921_s2 + $0xe8] sm:$0xff] %v616_v27  ;;  %v979_v37 = vadd.f32 %v978_v31, %v616_v27  ;;  %v1050_v38 = vmul.f32 %v616_v27, %v616_v27  ;;  %881 = vst [vmem:[%s1921_s2 + $0x1e8] sm:$0xff] %v1801_v28 }
 0x122   :  { %v1061_v31 = vmul.f32 %v1603_v10, %v1603_v10 }
 0x123   :  { %v980_v42 = vadd.f32 %v1293_v3, %v979_v37  ;;  %v1113_v46 = vadd.f32 %v1112_v34, %v1050_v38  ;;  %v1062_v34 = vmul.f32 %v1621_v20, %v1621_v20 }
 0x125   :  { %v1114_v51 = vadd.f32 %v1113_v46, %v1051_v39  ;;  %v981_v52 = vadd.f32 %v1294_v19, %v980_v42  ;;  %v1058_v19 = vmul.f32 %v1585_v0, %v1585_v0  ;;  %v1065_v46 = vmul.f32 %v1639_v30, %v1639_v30 }
 0x127   :  { %v982_v57 = vadd.f32 %v981_v52, %v1531_v43  ;;  %v1115_v58 = vadd.f32 %v1114_v51, %v1052_v48  ;;  %v1066_v52 = vmul.f32 %v1657_v40, %v1657_v40 }
 0x129   :  { %v983_v60 = vadd.f32 %v982_v57, %v1549_v47  ;;  %v1116_v1 = vadd.f32 %v1115_v58, %v1053_v55 }
 0x12b   :  { %v984_v3 = vadd.f32 %v1529_v41, %v983_v60  ;;  %v1117_v7 = vadd.f32 %v1116_v1, %v1054_v63  ;;  %v1059_v41 = vmul.f32 %v1558_v49, %v1558_v49  ;;  %v1069_v63 = vmul.f32 %v1675_v56, %v1675_v56 }
 0x12d   :  { %v1118_v9 = vadd.f32 %v1117_v7, %v1055_v2  ;;  %v985_v12 = vadd.f32 %v1540_v45, %v984_v3  ;;  %v1060_v45 = vmul.f32 %v1576_v59, %v1576_v59  ;;  %v1070_v3 = vmul.f32 %v1693_v4, %v1693_v4 }
 0x12f   :  { %v986_v43 = vadd.f32 %v985_v12, %v1567_v54  ;;  %v1119_v16 = vadd.f32 %v1118_v9, %v1056_v8 }
 0x131   :  { %v1120_v47 = vadd.f32 %v1119_v16, %v1057_v14  ;;  %v987_v18 = vadd.f32 %v986_v43, %v1585_v0  ;;  %v1073_v43 = vmul.f32 %v1711_v17, %v1711_v17 }
 0x133   :  { %v988_v22 = vadd.f32 %v1558_v49, %v987_v18  ;;  %v1121_v24 = vadd.f32 %v1120_v47, %v1058_v19  ;;  %v1063_v49 = vmul.f32 %v1594_v5, %v1594_v5  ;;  %v1074_v47 = vmul.f32 %v1729_v29, %v1729_v29 }
 0x135   :  { %v1122_v26 = vadd.f32 %v1121_v24, %v1059_v41  ;;  %v989_v27 = vadd.f32 %v1576_v59, %v988_v22  ;;  %v1064_v59 = vmul.f32 %v1612_v15, %v1612_v15  ;;  %v1077_v24 = vmul.f32 %v1747_v44, %v1747_v44 }
 0x137   :  { %v990_v54 = vadd.f32 %v989_v27, %v1603_v10  ;;  %v1123_v32 = vadd.f32 %v1122_v26, %v1060_v45  ;;  %v1078_v27 = vmul.f32 %v1765_v61, %v1765_v61 }
 0x139   :  { %v1124_v33 = vadd.f32 %v1123_v32, %v1061_v31  ;;  %v991_v0 = vadd.f32 %v990_v54, %v1621_v20 }
 0x13b   :  { %v992_v37 = vadd.f32 %v1594_v5, %v991_v0  ;;  %v1125_v38 = vadd.f32 %v1124_v33, %v1062_v34  ;;  %v1067_v5 = vmul.f32 %v1630_v25, %v1630_v25  ;;  %v1081_v0 = vmul.f32 %v1783_v13, %v1783_v13 }
 0x13d   :  { %v1126_v39 = vadd.f32 %v1125_v38, %v1063_v49  ;;  %v993_v42 = vadd.f32 %v1612_v15, %v992_v37  ;;  %v1068_v15 = vmul.f32 %v1648_v35, %v1648_v35  ;;  %v1082_v37 = vmul.f32 %v1801_v28, %v1801_v28 }
 0x13f   :  { %v994_v10 = vadd.f32 %v993_v42, %v1639_v30  ;;  %v1127_v48 = vadd.f32 %v1126_v39, %v1064_v59 }
 0x141   :  { %v1128_v51 = vadd.f32 %v1127_v48, %v1065_v46  ;;  %v995_v20 = vadd.f32 %v994_v10, %v1657_v40 }
 0x143   :  { %v996_v55 = vadd.f32 %v1630_v25, %v995_v20  ;;  %v1129_v57 = vadd.f32 %v1128_v51, %v1066_v52  ;;  %v1071_v25 = vmul.f32 %v1666_v50, %v1666_v50 }
 0x145   :  { %v1130_v58 = vadd.f32 %v1129_v57, %v1067_v5  ;;  %v997_v60 = vadd.f32 %v1648_v35, %v996_v55  ;;  %v1072_v35 = vmul.f32 %v1684_v62, %v1684_v62 }
 0x147   :  { %v998_v30 = vadd.f32 %v997_v60, %v1675_v56  ;;  %v1131_v1 = vadd.f32 %v1130_v58, %v1068_v15 }
 0x149   :  { %v1132_v2 = vadd.f32 %v1131_v1, %v1069_v63  ;;  %v999_v40 = vadd.f32 %v998_v30, %v1693_v4 }
 0x14b   :  { %v1000_v7 = vadd.f32 %v1666_v50, %v999_v40  ;;  %v1133_v8 = vadd.f32 %v1132_v2, %v1070_v3  ;;  %v1075_v50 = vmul.f32 %v1702_v11, %v1702_v11 }
 0x14d   :  { %v1134_v9 = vadd.f32 %v1133_v8, %v1071_v25  ;;  %v1001_v12 = vadd.f32 %v1684_v62, %v1000_v7  ;;  %v1076_v62 = vmul.f32 %v1720_v23, %v1720_v23 }
 0x14f   :  { %v1002_v56 = vadd.f32 %v1001_v12, %v1711_v17  ;;  %v1135_v14 = vadd.f32 %v1134_v9, %v1072_v35 }
 0x151   :  { %v1136_v16 = vadd.f32 %v1135_v14, %v1073_v43  ;;  %v1003_v4 = vadd.f32 %v1002_v56, %v1729_v29 }
 0x153   :  { %v1004_v18 = vadd.f32 %v1702_v11, %v1003_v4  ;;  %v1137_v19 = vadd.f32 %v1136_v16, %v1074_v47  ;;  %v1079_v11 = vmul.f32 %v1738_v36, %v1738_v36 }
 0x155   :  { %v1138_v41 = vadd.f32 %v1137_v19, %v1075_v50  ;;  %v1005_v22 = vadd.f32 %v1720_v23, %v1004_v18  ;;  %v1080_v23 = vmul.f32 %v1756_v53, %v1756_v53 }
 0x157   :  { %v1006_v17 = vadd.f32 %v1005_v22, %v1747_v44  ;;  %v1139_v45 = vadd.f32 %v1138_v41, %v1076_v62 }
 0x159   :  { %v1140_v26 = vadd.f32 %v1139_v45, %v1077_v24  ;;  %v1007_v29 = vadd.f32 %v1006_v17, %v1765_v61 }
 0x15b   :  { %v1008_v54 = vadd.f32 %v1738_v36, %v1007_v29  ;;  %v1141_v31 = vadd.f32 %v1140_v26, %v1078_v27  ;;  %v1083_v36 = vmul.f32 %v1774_v6, %v1774_v6 }
 0x15d   :  { %v1142_v32 = vadd.f32 %v1141_v31, %v1079_v11  ;;  %v1009_v33 = vadd.f32 %v1756_v53, %v1008_v54  ;;  %v1084_v53 = vmul.f32 %v1792_v21, %v1792_v21 }
 0x15f   :  { %v1010_v44 = vadd.f32 %v1009_v33, %v1783_v13  ;;  %v1143_v34 = vadd.f32 %v1142_v32, %v1080_v23 }
 0x161   :  { %v1144_v49 = vadd.f32 %v1143_v34, %v1081_v0  ;;  %v1011_v61 = vadd.f32 %v1010_v44, %v1801_v28 }
 0x163   :  { %v1012_v38 = vadd.f32 %v1774_v6, %v1011_v61  ;;  %v1145_v59 = vadd.f32 %v1144_v49, %v1082_v37 }
 0x165   :  { %v1013_v39 = vadd.f32 %v1792_v21, %v1012_v38  ;;  %v1146_v42 = vadd.f32 %v1145_v59, %v1083_v36 }
 0x167   :  { %v1014_v13 = vrot.slane %v1013_v39, 4  ;;  %v1147_v10 = vadd.f32 %v1146_v42, %v1084_v53 }
 0x169   :  { %v1015_v46 = vadd.f32 %v1014_v13, %v1013_v39  ;;  %v1148_v48 = vrot.slane %v1147_v10, 4 }
 0x16b   :  { %v1016_v51 = vrot.slane %v1015_v46, 2  ;;  %v1149_v20 = vadd.f32 %v1148_v48, %v1147_v10 }
 0x16d   :  { %v1017_v52 = vadd.f32 %v1016_v51, %v1015_v46  ;;  %v1150_v28 = vrot.slane %v1149_v20, 2 }
 0x16f   :  { %v1018_v5 = vrot.slane %v1017_v52, 1  ;;  %v1151_v55 = vadd.f32 %v1150_v28, %v1149_v20 }
 0x171   :  { %v1019_v57 = vadd.f32 %v1018_v5, %v1017_v52  ;;  %v1152_v15 = vrot.slane %v1151_v55, 1 }
 0x173   :  { %1020 = vst [vmem:[%s1922_s3] sm:$0x1] %v1019_v57  ;;  %v1153_v6 = vadd.f32 %v1152_v15, %v1151_v55 }
 0x175   :  { %1154 = vst [vmem:[%s1923_s4] sm:$0x1] %v1153_v6 }

</bundles_post_ra>
